<compile_context>
chip_gen: v5e
topology: v5e:2x2
jax: 0.10.0
libtpu: 0.0.40
codegen_flags: <defaults>
</compile_context>

<pallas_src>
import math

import jax
import jax.numpy as jnp
from jax.experimental import pallas as pl
from jax.experimental.pallas import tpu as pltpu


# ----------------------------------------------------------------------------
# Small helpers
# ----------------------------------------------------------------------------
def _round_up(x, m):
    return ((x + m - 1) // m) * m


def _round_down(x, m):
    return (x // m) * m


def _vmem_capacity_bytes():
    """Per-generation physical VMEM (v5e/v6e: 128 MiB, v7x: 64 MiB)."""
    try:
        info = pltpu.get_tpu_info()
        for attr in ("vmem_capacity_bytes", "vmem_size_bytes", "vmem_bytes"):
            v = getattr(info, attr, None)
            if v:
                return int(v)
    except Exception:
        pass
    return 64 * 1024 * 1024          # conservative fallback (v7x is the smallest)


def _quant_scale(vmin, vmax):
    # Quantize_int8 parameters: s = (max - min) / 255, z = -(min / s) - 128.
    # Returns (1/s, z) so kernels multiply instead of dividing per element.
    rng = vmax - vmin
    s = jnp.where(rng > 0, rng / 255.0, jnp.float32(1.0))   # guard s == 0
    z = -(vmin / s) - 128.0
    return (1.0 / s).astype(jnp.float32), z.astype(jnp.float32)


# ----------------------------------------------------------------------------
# Plain-JAX glue: sampling & grouping (index shuffling, not the hot path)
# ----------------------------------------------------------------------------
def get_dists(points1, points2):
    d = (jnp.sum(points1 ** 2, axis=-1)[:, :, None]
         + jnp.sum(points2 ** 2, axis=-1)[:, None, :])
    d = d - 2.0 * jnp.einsum('bmc,bnc->bmn', points1, points2)
    d = jnp.where(d < 0, 1e-7, d)
    return jnp.sqrt(d).astype(jnp.float32)


def fps(xyz, M, key):
    B, N, _ = xyz.shape
    inds = jax.random.randint(key, (B,), 0, N).astype(jnp.int32)
    dists = jnp.full((B, N), 1e5, dtype=jnp.float32)
    centroids = jnp.zeros((B, M), dtype=jnp.int32)
    batch = jnp.arange(B)

    def body(i, carry):
        centroids, dists, inds = carry
        centroids = centroids.at[:, i].set(inds)
        cur = xyz[batch, inds, :]
        cur_d = get_dists(cur[:, None, :], xyz)[:, 0, :]
        dists = jnp.where(cur_d < dists, cur_d, dists)
        inds = jnp.argmax(dists, axis=1).astype(jnp.int32)
        return centroids, dists, inds

    centroids, _, _ = jax.lax.fori_loop(0, M, body, (centroids, dists, inds))
    return centroids


def gather_points(points, inds):
    B = points.shape[0]
    flat = inds.reshape(B, -1)
    out = jnp.take_along_axis(points, flat[..., None], axis=1)
    return out.reshape(inds.shape + (points.shape[-1],))


def ball_query(xyz, new_xyz, radius, K):
    B, N, _ = xyz.shape
    M = new_xyz.shape[1]
    grouped_inds = jnp.broadcast_to(jnp.arange(N, dtype=jnp.int32), (B, M, N))
    dists = get_dists(new_xyz, xyz)
    grouped_inds = jnp.where(dists > radius, N, grouped_inds)
    grouped_inds = jnp.sort(grouped_inds, axis=-1)[:, :, :K]
    first = grouped_inds[:, :, 0:1]
    grouped_inds = jnp.where(grouped_inds == N,
                             jnp.broadcast_to(first, grouped_inds.shape),
                             grouped_inds)
    return grouped_inds


def sample_and_group(xyz, points, M, radius, K, key, use_xyz=True):
    new_xyz = gather_points(xyz, fps(xyz, M, key))
    grouped_inds = ball_query(xyz, new_xyz, radius, K)
    grouped_xyz = gather_points(xyz, grouped_inds) - new_xyz[:, :, None, :]
    if points is not None:
        grouped_points = gather_points(points, grouped_inds)
        if use_xyz:
            new_points = jnp.concatenate(
                [grouped_xyz.astype(jnp.float32),
                 grouped_points.astype(jnp.float32)], axis=-1)
        else:
            new_points = grouped_points
    else:
        new_points = grouped_xyz
    return new_xyz, new_points, grouped_inds, grouped_xyz


def sample_and_group_all(xyz, points, use_xyz=True):
    B, M, C = xyz.shape
    new_xyz = jnp.zeros((B, 1, C), dtype=jnp.float32)
    grouped_inds = jnp.broadcast_to(jnp.arange(M, dtype=jnp.int32), (B, 1, M))
    grouped_xyz = xyz.reshape(B, 1, M, C)
    if points is not None:
        if use_xyz:
            new_points = jnp.concatenate(
                [xyz.astype(jnp.float32), points.astype(jnp.float32)], axis=2)
        else:
            new_points = points
        new_points = new_points[:, None, ...]
    else:
        new_points = grouped_xyz
    return new_xyz, new_points, grouped_inds, grouped_xyz


# ----------------------------------------------------------------------------
# Pallas kernels
# ----------------------------------------------------------------------------
def _make_quant_stats_kernel(rows_real, xq_dtype):
    """Pass A: quantize x -> emit xq; bf16 MXU matmul with pre-quantized weight;
    emit per-tile per-channel sum / sum-of-squares partials (BN batch stats)."""
    def kernel(x_ref, q_ref, wq_ref, xq_ref, stats_ref):
        x = x_ref[...].astype(jnp.float32)
        # round-half-to-even, like torch.round; clip guards the int8 cast and
        # bf16-stored activations (exact ints in [-128,127] survive the cast).
        xq = jnp.clip(jnp.round(x * q_ref[0] + q_ref[1]), -128.0, 127.0)
        xq_ref[...] = xq.astype(xq_dtype)
        y = jnp.dot(xq.astype(jnp.bfloat16), wq_ref[...],
                    preferred_element_type=jnp.float32)
        tile_r = x.shape[0]
        row = (jax.lax.broadcasted_iota(jnp.int32, (tile_r, 1), 0)
               + pl.program_id(0) * tile_r)
        valid = (row < rows_real).astype(jnp.float32)          # mask padded rows
        ym = y * valid
        stats_ref[0, 0:1, :] = jnp.sum(ym, axis=0, keepdims=True)
        stats_ref[0, 1:2, :] = jnp.sum(ym * y, axis=0, keepdims=True)
    return kernel


def _make_quant_only_kernel(xq_dtype):
    """Pass A (bn=False): quantize x -> xq only (no BN statistics needed)."""
    def kernel(x_ref, q_ref, xq_ref):
        x = x_ref[...].astype(jnp.float32)
        xq = jnp.clip(jnp.round(x * q_ref[0] + q_ref[1]), -128.0, 127.0)
        xq_ref[...] = xq.astype(xq_dtype)
    return kernel


def _make_apply_kernel(rows_real):
    """Pass B (middle layers): xq matmul -> BN scale/shift -> ReLU.
    Writes bf16 next-layer activations + per-tile per-channel min/max partials
    (next layer's Quantize_int8 range)."""
    def kernel(xq_ref, wq_ref, scale_ref, shift_ref, xnext_ref, mm_ref):
        # int8/bf16 -> f32 -> bf16 keeps the convert path simple; values exact.
        xq = xq_ref[...].astype(jnp.float32).astype(jnp.bfloat16)
        y = jnp.dot(xq, wq_ref[...], preferred_element_type=jnp.float32)
        v = jnp.maximum(y * scale_ref[...] + shift_ref[...], 0.0)
        vb = v.astype(jnp.bfloat16)
        xnext_ref[...] = vb
        vf = vb.astype(jnp.float32)            # min/max of the values actually stored
        tile_r = vf.shape[0]
        row = (jax.lax.broadcasted_iota(jnp.int32, (tile_r, 1), 0)
               + pl.program_id(0) * tile_r)
        valid = row < rows_real
        big = jnp.float32(3.0e38)
        mm_ref[0, 0:1, :] = jnp.min(jnp.where(valid, vf, big), axis=0, keepdims=True)
        mm_ref[0, 1:2, :] = jnp.max(jnp.where(valid, vf, -big), axis=0, keepdims=True)
    return kernel


def _make_final_kernel(k_neighbors, pooling):
    """Pass B (last layer): xq matmul -> BN -> ReLU -> K max/avg pool."""
    def kernel(xq_ref, wq_ref, scale_ref, shift_ref, out_ref):
        xq = xq_ref[...].astype(jnp.float32).astype(jnp.bfloat16)
        y = jnp.dot(xq, wq_ref[...], preferred_element_type=jnp.float32)
        v = jnp.maximum(y * scale_ref[...] + shift_ref[...], 0.0)
        tile_r, cpad = v.shape
        vg = v.reshape(tile_r // k_neighbors, k_neighbors, cpad)
        if pooling == 'avg':
            out_ref[...] = jnp.mean(vg, axis=1)
        else:
            out_ref[...] = jnp.max(vg, axis=1)
    return kernel


# ----------------------------------------------------------------------------
# Module wrapper
# ----------------------------------------------------------------------------
class PointNetSAModulePallas:
    def __init__(self, M, radius, K, in_channels, mlp, group_all, key,
                 bn=True, pooling='max', use_xyz=True):
        self.M = M
        self.radius = radius
        self.K = K
        self.in_channels = in_channels
        self.mlp = list(mlp)
        self.group_all = group_all
        self.bn = bn
        self.pooling = pooling
        self.use_xyz = use_xyz

        # Pre-quantize (Quantize_int8 on the real weight, as in the reference),
        # pre-transpose and zero-pad the weights once at init: padded rows/cols
        # are zero so padded channels never contribute to the matmul.
        self.wq_list, self.gammas, self.betas = [], [], []
        self.layer_dims = []                 # (cin_pad, cout_real, cout_pad)
        c_in = in_channels
        cin_p = _round_up(in_channels, 8)    # layer-0 input: sublane-friendly pad only
        for c_out in self.mlp:
            key, wk = jax.random.split(key)
            bound = 1.0 / math.sqrt(c_in)    # nn.Conv2d default init bound
            w = jax.random.uniform(wk, (c_out, c_in), minval=-bound, maxval=bound,
                                   dtype=jnp.float32)
            inv_s, z = _quant_scale(jnp.min(w), jnp.max(w))
            wq = jnp.round(w * inv_s + z)                       # ints in [-128, 127]
            cout_p = _round_up(c_out, 128)
            wq_t = jnp.zeros((cin_p, cout_p), jnp.float32).at[:c_in, :c_out].set(wq.T)
            self.wq_list.append(wq_t.astype(jnp.bfloat16))      # exact in bf16
            self.gammas.append(jnp.ones((cout_p,), jnp.float32))
            self.betas.append(jnp.zeros((cout_p,), jnp.float32))
            self.layer_dims.append((cin_p, c_out, cout_p))
            c_in = c_out
            cin_p = cout_p

    # ------------------------------------------------------------------
    def _tiling(self, G, K):
        """Pick groups-per-tile from a per-generation VMEM budget and keep the
        parallel grid >= 2 (prefer even) tiles for v7x's two TensorCores."""
        vmem_cap = _vmem_capacity_bytes()
        budget = max(8 << 20, min(vmem_cap // 2 - (4 << 20), 56 << 20))
        vmem_limit = int(min(budget + (8 << 20), vmem_cap * 3 // 4))

        # Worst per-slab-row bytes over all layers & passes (conservative:
        # count xq and inter-layer activations at 2 B) plus resident weights.
        per_row, fixed = 8, 0
        x_b = 4                                   # layer-0 slab is f32
        n_layers = len(self.layer_dims)
        for li, (cin_p, c_out, cout_p) in enumerate(self.layer_dims):
            xq_b = 2
            pa = cin_p * (x_b + xq_b)                              # pass A traffic/row
            if li == n_layers - 1:
                pb = cin_p * xq_b + (cout_p * 4 + K - 1) // K      # pooled output
            else:
                pb = cin_p * xq_b + cout_p * 2                     # bf16 xnext
            per_row = max(per_row, pa, pb)
            fixed = max(fixed, 2 * cin_p * cout_p * 2 + 8 * cout_p * 4)
            x_b = 2                                   # middle activations are bf16
        avail = max(budget - fixed - (2 << 20), per_row * K)
        rows = avail // (2 * per_row)                 # streamed bufs double-buffered
        rows = max(K, min(rows, 4096))                # ~2048-4096-row tiles target
        gpt = max(8, _round_down(max(rows // K, 8), 8))
        gpt = min(gpt, _round_up(G, 8))

        # v7x has 2 TensorCores: give the "parallel" axis at least 2 tiles.
        if G > 8 and _round_up(G, gpt) // gpt < 2:
            gpt = max(8, _round_up((G + 1) // 2, 8))
        # Prefer an even number of tiles (balanced megacore split).
        n_tiles = _round_up(G, gpt) // gpt
        if n_tiles > 1 and n_tiles % 2 == 1:
            for cand in range(gpt - 8, 7, -8):
                m = _round_up(G, cand) // cand
                if m % 2 == 0 and m * cand - G <= max(cand, G // 8 + 8):
                    gpt = cand
                    break
        return gpt, vmem_limit

    # ------------------------------------------------------------------
    def _backbone_and_pool(self, new_points):
        B, M, Kn, Cin = (int(s) for s in new_points.shape)
        assert Cin == self.in_channels
        G = B * M                    # centroid groups
        R = G * Kn                   # real rows of the slab

        gpt, vmem_limit = self._tiling(G, Kn)
        g_pad = _round_up(G, gpt)
        r_pad = g_pad * Kn
        n_tiles = g_pad // gpt
        tile_r = gpt * Kn

        cin_p0 = self.layer_dims[0][0]

        # Exact global min/max of the real (unpadded) first-layer input, exactly
        # as Quantize_int8 does over the whole tensor.
        inv_s, zpt = _quant_scale(jnp.min(new_points), jnp.max(new_points))

        # (B, M, K, C) -> row-major slab, padding (rows by whole groups, channels
        # to the sublane-friendly width) folded into the slab construction.
        x = jnp.zeros((r_pad, cin_p0), jnp.float32)
        x = x.at[:R, :Cin].set(new_points.reshape(R, Cin).astype(jnp.float32))

        cparams = pltpu.CompilerParams(
            dimension_semantics=("parallel",),            # megacore / 2nd TC on v7x
            vmem_limit_bytes=vmem_limit)

        smem_spec = pl.BlockSpec(memory_space=pltpu.MemorySpace.SMEM)
        n_layers = len(self.layer_dims)
        pooled = None
        for li, (cin_p, c_out, cout_p) in enumerate(self.layer_dims):
            wq = self.wq_list[li]
            qvec = jnp.stack([inv_s, zpt]).astype(jnp.float32)   # (2,) SMEM scalars

            # int8 handoff when lane/sublane aligned (exact), else bf16 (exact).
            xq_dtype = (jnp.int8 if (cin_p % 128 == 0 and tile_r % 32 == 0)
                        else jnp.bfloat16)
            xq_bytes = jnp.dtype(xq_dtype).itemsize
            x_bytes = jnp.dtype(x.dtype).itemsize

            x_spec = pl.BlockSpec((tile_r, cin_p), lambda t: (t, 0))
            xq_spec = pl.BlockSpec((tile_r, cin_p), lambda t: (t, 0))
            w_spec = pl.BlockSpec((cin_p, cout_p), lambda t: (0, 0))
            vec_spec = pl.BlockSpec((1, cout_p), lambda t: (0, 0))
            stats_spec = pl.BlockSpec((1, 2, cout_p), lambda t: (t, 0, 0))

            mm_flops = 2 * r_pad * cin_p * cout_p

            if self.bn:
                # Pass A: quantize + per-tile BN partial statistics.
                xq, stats = pl.pallas_call(
                    _make_quant_stats_kernel(R, xq_dtype),
                    grid=(n_tiles,),
                    in_specs=[x_spec, smem_spec, w_spec],
                    out_specs=(xq_spec, stats_spec),
                    out_shape=(jax.ShapeDtypeStruct((r_pad, cin_p), xq_dtype),
                               jax.ShapeDtypeStruct((n_tiles, 2, cout_p),
                                                    jnp.float32)),
                    compiler_params=cparams,
                    cost_estimate=pl.CostEstimate(
                        flops=mm_flops + 6 * r_pad * cout_p,
                        transcendentals=0,
                        bytes_accessed=(x_bytes * r_pad * cin_p
                                        + xq_bytes * r_pad * cin_p
                                        + 2 * cin_p * cout_p
                                        + 8 * n_tiles * cout_p)),
                )(x, qvec, wq)
                ssum = jnp.sum(stats[:, 0, :], axis=0)
                ssq = jnp.sum(stats[:, 1, :], axis=0)
                mean = ssum / R
                # TODO(synk): E[y^2]-E[y]^2 can lose precision when |mean| >> std;
                # switch to a centered two-pass variance if that ever matters.
                var = jnp.maximum(ssq / R - mean * mean, 0.0)
                scale = self.gammas[li] * jax.lax.rsqrt(var + 1e-5)
                shift = self.betas[li] - mean * scale
            else:
                # No BN: just produce the quantized handoff slab.
                xq = pl.pallas_call(
                    _make_quant_only_kernel(xq_dtype),
                    grid=(n_tiles,),
                    in_specs=[x_spec, smem_spec],
                    out_specs=xq_spec,
                    out_shape=jax.ShapeDtypeStruct((r_pad, cin_p), xq_dtype),
                    compiler_params=cparams,
                )(x, qvec)
                scale = jnp.ones((cout_p,), jnp.float32)
                shift = jnp.zeros((cout_p,), jnp.float32)
            scale = scale[None, :]
            shift = shift[None, :]

            if li < n_layers - 1:
                # Pass B: normalize + ReLU, emit bf16 next activations + min/max
                # partials for the next layer's Quantize_int8.
                x, mm = pl.pallas_call(
                    _make_apply_kernel(R),
                    grid=(n_tiles,),
                    in_specs=[xq_spec, w_spec, vec_spec, vec_spec],
                    out_specs=(pl.BlockSpec((tile_r, cout_p), lambda t: (t, 0)),
                               stats_spec),
                    out_shape=(jax.ShapeDtypeStruct((r_pad, cout_p), jnp.bfloat16),
                               jax.ShapeDtypeStruct((n_tiles, 2, cout_p),
                                                    jnp.float32)),
                    compiler_params=cparams,
                    cost_estimate=pl.CostEstimate(
                        flops=mm_flops + 8 * r_pad * cout_p,
                        transcendentals=0,
                        bytes_accessed=(xq_bytes * r_pad * cin_p
                                        + 2 * r_pad * cout_p
                                        + 2 * cin_p * cout_p
                                        + 8 * n_tiles * cout_p)),
                )(xq, wq, scale, shift)
                xmin = jnp.min(mm[:, 0, :c_out])     # real channels only
                xmax = jnp.max(mm[:, 1, :c_out])
                inv_s, zpt = _quant_scale(xmin, xmax)
            else:
                # Pass B (last layer): fuse the K max/avg pool; lane-dense output.
                pooled = pl.pallas_call(
                    _make_final_kernel(Kn, self.pooling),
                    grid=(n_tiles,),
                    in_specs=[xq_spec, w_spec, vec_spec, vec_spec],
                    out_specs=pl.BlockSpec((gpt, cout_p), lambda t: (t, 0)),
                    out_shape=jax.ShapeDtypeStruct((g_pad, cout_p), jnp.float32),
                    compiler_params=cparams,
                    cost_estimate=pl.CostEstimate(
                        flops=mm_flops + 8 * r_pad * cout_p,
                        transcendentals=0,
                        bytes_accessed=(xq_bytes * r_pad * cin_p
                                        + 4 * g_pad * cout_p
                                        + 2 * cin_p * cout_p)),
                )(xq, wq, scale, shift)

        cout_last = self.mlp[-1]
        return pooled[:G, :cout_last].reshape(B, M, cout_last)

    # ------------------------------------------------------------------
    def __call__(self, xyz, points, key):
        if self.group_all:
            new_xyz, new_points, _, _ = sample_and_group_all(xyz, points, self.use_xyz)
        else:
            new_xyz, new_points, _, _ = sample_and_group(
                xyz, points, self.M, self.radius, self.K, key, self.use_xyz)
        feats = self._backbone_and_pool(new_points)       # (B, M, mlp[-1])
        return new_xyz, feats


# ----------------------------------------------------------------------------
if __name__ == "__main__":
    key = jax.random.PRNGKey(0)
    k_xyz, k_pts, k_fps, k_w = jax.random.split(key, 4)

    B, N, C_feat = 2, 32, 3            # small synthetic point cloud
    M, radius, K = 8, 0.4, 8           # sampled centroids / ball query params
    mlp = [16, 16, 32]
    in_channels = 3 + C_feat           # use_xyz=True -> xyz concatenated

    xyz = jax.random.uniform(k_xyz, (B, N, 3), dtype=jnp.float32)
    points = jax.random.normal(k_pts, (B, N, C_feat), dtype=jnp.float32)

    module = PointNetSAModulePallas(M=M, radius=radius, K=K,
                                    in_channels=in_channels, mlp=mlp,
                                    group_all=False, key=k_w,
                                    bn=True, pooling='max', use_xyz=True)

    fwd = jax.jit(lambda a, b: module(a, b, k_fps))
    new_xyz, new_feats = fwd(xyz, points)
    jax.block_until_ready((new_xyz, new_feats))

    assert new_xyz.shape == (B, M, 3)
    assert new_feats.shape == (B, M, mlp[-1])
    assert bool(jnp.all(jnp.isfinite(new_feats)))
    print("KERNEL_OK")
</pallas_src>

<mosaic_0001>
module attributes {stable_mosaic.version = 11 : i64} {
  func.func @kernel(%arg0: i32, %arg1: memref<64x8xf32, #tpu.memory_space<vmem>>, %arg2: memref<2xf32, #tpu.memory_space<smem>>, %arg3: memref<8x128xbf16, #tpu.memory_space<vmem>>, %arg4: memref<64x8xbf16, #tpu.memory_space<vmem>>, %arg5: memref<1x2x128xf32, #tpu.memory_space<vmem>>) attributes {dimension_semantics = [#tpu.dimension_semantics<parallel>], iteration_bounds = array<i64: 2>, scalar_prefetch = 0 : i64, scratch_operands = 0 : i64, tpu.core_type = #tpu.core_type<tc>, window_params = [{transform_indices = @transform_0, window_bounds = array<i64: 64, 8>}, {transform_indices = @transform_1, window_bounds = array<i64: 2>}, {pipeline_mode = #tpu.pipeline_mode<synchronous>, transform_indices = @transform_2, window_bounds = array<i64: 8, 128>}, {transform_indices = @transform_3, window_bounds = array<i64: 64, 8>}, {transform_indices = @transform_4, window_bounds = array<i64: 1, 2, 128>}]} {
    %c0 = arith.constant 0 : index
    %c0_0 = arith.constant 0 : index
    %0 = vector.load %arg1[%c0, %c0_0] : memref<64x8xf32, #tpu.memory_space<vmem>>, vector<64x8xf32>
    %c0_1 = arith.constant 0 : index
    %1 = memref.load %arg2[%c0_1] : memref<2xf32, #tpu.memory_space<smem>>
    %2 = vector.broadcast %1 : f32 to vector<64x8xf32>
    %3 = arith.mulf %0, %2 : vector<64x8xf32>
    %c1 = arith.constant 1 : index
    %4 = memref.load %arg2[%c1] : memref<2xf32, #tpu.memory_space<smem>>
    %5 = vector.broadcast %4 : f32 to vector<64x8xf32>
    %6 = arith.addf %3, %5 : vector<64x8xf32>
    %7 = math.roundeven %6 : vector<64x8xf32>
    %cst = arith.constant -1.280000e+02 : f32
    %cst_2 = arith.constant 1.270000e+02 : f32
    %8 = vector.broadcast %cst : f32 to vector<64x8xf32>
    %9 = arith.maximumf %8, %7 : vector<64x8xf32>
    %10 = vector.broadcast %cst_2 : f32 to vector<64x8xf32>
    %11 = arith.minimumf %10, %9 : vector<64x8xf32>
    %12 = arith.truncf %11 : vector<64x8xf32> to vector<64x8xbf16>
    %c0_3 = arith.constant 0 : index
    %c0_4 = arith.constant 0 : index
    %13 = vector.load %arg4[%c0_3, %c0_4] : memref<64x8xbf16, #tpu.memory_space<vmem>>, vector<64x8xbf16>
    tpu.vector_store %arg4[%c0_3, %c0_4], %12 {strides = array<i32>} : memref<64x8xbf16, #tpu.memory_space<vmem>>, vector<64x8xbf16>,
    %14 = arith.truncf %11 : vector<64x8xf32> to vector<64x8xbf16>
    %c0_5 = arith.constant 0 : index
    %c0_6 = arith.constant 0 : index
    %15 = vector.load %arg3[%c0_5, %c0_6] : memref<8x128xbf16, #tpu.memory_space<vmem>>, vector<8x128xbf16>
    %cst_7 = arith.constant dense<0.000000e+00> : vector<64x128xf32>
    %16 = tpu.matmul %14, %15, %cst_7 {dimension_numbers = #tpu.dot_dimension_numbers<[1], [0], [0], [1], [0, 0, 1, 1], [], []>} : vector<64x8xbf16>, vector<8x128xbf16>, vector<64x128xf32> -> vector<64x128xf32>
    %17 = tpu.iota {dimensions = array<i32: 0>} : vector<64x1xi32>
    %c64_i32 = arith.constant 64 : i32
    %18 = arith.muli %arg0, %c64_i32 : i32
    %19 = vector.broadcast %18 : i32 to vector<64x1xi32>
    %20 = arith.addi %17, %19 : vector<64x1xi32>
    %c128_i32 = arith.constant 128 : i32
    %21 = vector.broadcast %c128_i32 : i32 to vector<64x1xi32>
    %22 = arith.cmpi slt, %20, %21 : vector<64x1xi32>
    %23 = arith.extui %22 : vector<64x1xi1> to vector<64x1xi32>
    %24 = arith.sitofp %23 : vector<64x1xi32> to vector<64x1xf32>
    %25 = vector.broadcast %24 : vector<64x1xf32> to vector<64x128xf32>
    %26 = arith.mulf %16, %25 : vector<64x128xf32>
    %cst_8 = arith.constant dense<0.000000e+00> : vector<128xf32>
    %27 = vector.multi_reduction <add>, %26, %cst_8 [0] : vector<64x128xf32> to vector<128xf32>
    %28 = vector.shape_cast %27 : vector<128xf32> to vector<1x128xf32>
    %c0_9 = arith.constant 0 : index
    %c0_10 = arith.constant 0 : index
    %c0_11 = arith.constant 0 : index
    %29 = vector.load %arg5[%c0_9, %c0_10, %c0_11] : memref<1x2x128xf32, #tpu.memory_space<vmem>>, vector<1x1x128xf32>
    %30 = vector.shape_cast %29 : vector<1x1x128xf32> to vector<1x128xf32>
    %31 = vector.shape_cast %28 : vector<1x128xf32> to vector<1x1x128xf32>
    tpu.vector_store %arg5[%c0_9, %c0_10, %c0_11], %31 {strides = array<i32>} : memref<1x2x128xf32, #tpu.memory_space<vmem>>, vector<1x1x128xf32>,
    %32 = arith.mulf %26, %16 : vector<64x128xf32>
    %cst_12 = arith.constant dense<0.000000e+00> : vector<128xf32>
    %33 = vector.multi_reduction <add>, %32, %cst_12 [0] : vector<64x128xf32> to vector<128xf32>
    %34 = vector.shape_cast %33 : vector<128xf32> to vector<1x128xf32>
    %c0_13 = arith.constant 0 : index
    %c1_14 = arith.constant 1 : index
    %c0_15 = arith.constant 0 : index
    %35 = vector.load %arg5[%c0_13, %c1_14, %c0_15] : memref<1x2x128xf32, #tpu.memory_space<vmem>>, vector<1x1x128xf32>
    %36 = vector.shape_cast %35 : vector<1x1x128xf32> to vector<1x128xf32>
    %37 = vector.shape_cast %34 : vector<1x128xf32> to vector<1x1x128xf32>
    tpu.vector_store %arg5[%c0_13, %c1_14, %c0_15], %37 {strides = array<i32>} : memref<1x2x128xf32, #tpu.memory_space<vmem>>, vector<1x1x128xf32>,
    return
  }
  func.func @transform_0(%arg0: i32) -> (i32, i32) {
    %c0_i32 = arith.constant 0 : i32
    %c0_i32_0 = arith.constant 0 : i32
    return %arg0, %c0_i32 : i32, i32
  }
  func.func @transform_1(%arg0: i32) -> i32 {
    %c0_i32 = arith.constant 0 : i32
    %c0_i32_0 = arith.constant 0 : i32
    return %c0_i32 : i32
  }
  func.func @transform_2(%arg0: i32) -> (i32, i32) {
    %c0_i32 = arith.constant 0 : i32
    %c0_i32_0 = arith.constant 0 : i32
    %c0_i32_1 = arith.constant 0 : i32
    return %c0_i32, %c0_i32_0 : i32, i32
  }
  func.func @transform_3(%arg0: i32) -> (i32, i32) {
    %c0_i32 = arith.constant 0 : i32
    %c0_i32_0 = arith.constant 0 : i32
    return %arg0, %c0_i32 : i32, i32
  }
  func.func @transform_4(%arg0: i32) -> (i32, i32, i32) {
    %c0_i32 = arith.constant 0 : i32
    %c0_i32_0 = arith.constant 0 : i32
    %c0_i32_1 = arith.constant 0 : i32
    return %arg0, %c0_i32, %c0_i32_0 : i32, i32, i32
  }
}

module attributes {stable_mosaic.version = 11 : i64} {
  func.func @kernel(%arg0: i32, %arg1: memref<64x8xbf16, #tpu.memory_space<vmem>>, %arg2: memref<8x128xbf16, #tpu.memory_space<vmem>>, %arg3: memref<1x128xf32, #tpu.memory_space<vmem>>, %arg4: memref<1x128xf32, #tpu.memory_space<vmem>>, %arg5: memref<64x128xbf16, #tpu.memory_space<vmem>>, %arg6: memref<1x2x128xf32, #tpu.memory_space<vmem>>) attributes {dimension_semantics = [#tpu.dimension_semantics<parallel>], iteration_bounds = array<i64: 2>, scalar_prefetch = 0 : i64, scratch_operands = 0 : i64, tpu.core_type = #tpu.core_type<tc>, window_params = [{transform_indices = @transform_0, window_bounds = array<i64: 64, 8>}, {pipeline_mode = #tpu.pipeline_mode<synchronous>, transform_indices = @transform_1, window_bounds = array<i64: 8, 128>}, {pipeline_mode = #tpu.pipeline_mode<synchronous>, transform_indices = @transform_2, window_bounds = array<i64: 1, 128>}, {pipeline_mode = #tpu.pipeline_mode<synchronous>, transform_indices = @transform_3, window_bounds = array<i64: 1, 128>}, {transform_indices = @transform_4, window_bounds = array<i64: 64, 128>}, {transform_indices = @transform_5, window_bounds = array<i64: 1, 2, 128>}]} {
    %c0 = arith.constant 0 : index
    %c0_0 = arith.constant 0 : index
    %0 = vector.load %arg1[%c0, %c0_0] : memref<64x8xbf16, #tpu.memory_space<vmem>>, vector<64x8xbf16>
    %1 = arith.extf %0 : vector<64x8xbf16> to vector<64x8xf32>
    %2 = arith.truncf %1 : vector<64x8xf32> to vector<64x8xbf16>
    %c0_1 = arith.constant 0 : index
    %c0_2 = arith.constant 0 : index
    %3 = vector.load %arg2[%c0_1, %c0_2] : memref<8x128xbf16, #tpu.memory_space<vmem>>, vector<8x128xbf16>
    %cst = arith.constant dense<0.000000e+00> : vector<64x128xf32>
    %4 = tpu.matmul %2, %3, %cst {dimension_numbers = #tpu.dot_dimension_numbers<[1], [0], [0], [1], [0, 0, 1, 1], [], []>} : vector<64x8xbf16>, vector<8x128xbf16>, vector<64x128xf32> -> vector<64x128xf32>
    %c0_3 = arith.constant 0 : index
    %c0_4 = arith.constant 0 : index
    %5 = vector.load %arg3[%c0_3, %c0_4] : memref<1x128xf32, #tpu.memory_space<vmem>>, vector<1x128xf32>
    %6 = vector.broadcast %5 : vector<1x128xf32> to vector<64x128xf32>
    %7 = arith.mulf %4, %6 : vector<64x128xf32>
    %c0_5 = arith.constant 0 : index
    %c0_6 = arith.constant 0 : index
    %8 = vector.load %arg4[%c0_5, %c0_6] : memref<1x128xf32, #tpu.memory_space<vmem>>, vector<1x128xf32>
    %9 = vector.broadcast %8 : vector<1x128xf32> to vector<64x128xf32>
    %10 = arith.addf %7, %9 : vector<64x128xf32>
    %cst_7 = arith.constant 0.000000e+00 : f32
    %11 = vector.broadcast %cst_7 : f32 to vector<64x128xf32>
    %12 = arith.maximumf %10, %11 : vector<64x128xf32>
    %13 = arith.truncf %12 : vector<64x128xf32> to vector<64x128xbf16>
    %c0_8 = arith.constant 0 : index
    %c0_9 = arith.constant 0 : index
    %14 = vector.load %arg5[%c0_8, %c0_9] : memref<64x128xbf16, #tpu.memory_space<vmem>>, vector<64x128xbf16>
    tpu.vector_store %arg5[%c0_8, %c0_9], %13 {strides = array<i32>} : memref<64x128xbf16, #tpu.memory_space<vmem>>, vector<64x128xbf16>,
    %15 = arith.extf %13 : vector<64x128xbf16> to vector<64x128xf32>
    %16 = tpu.iota {dimensions = array<i32: 0>} : vector<64x1xi32>
    %c64_i32 = arith.constant 64 : i32
    %17 = arith.muli %arg0, %c64_i32 : i32
    %18 = vector.broadcast %17 : i32 to vector<64x1xi32>
    %19 = arith.addi %16, %18 : vector<64x1xi32>
    %c128_i32 = arith.constant 128 : i32
    %20 = vector.broadcast %c128_i32 : i32 to vector<64x1xi32>
    %21 = arith.cmpi slt, %19, %20 : vector<64x1xi32>
    %cst_10 = arith.constant 3.000000e+38 : f32
    %22 = vector.shape_cast %21 : vector<64x1xi1> to vector<64x1xi1>
    %23 = vector.broadcast %22 : vector<64x1xi1> to vector<64x128xi1>
    %24 = vector.broadcast %cst_10 : f32 to vector<64x128xf32>
    %25 = arith.select %23, %15, %24 : vector<64x128xi1>, vector<64x128xf32>
    %cst_11 = arith.constant dense<0x7F800000> : vector<128xf32>
    %26 = vector.multi_reduction <minimumf>, %25, %cst_11 [0] : vector<64x128xf32> to vector<128xf32>
    %27 = vector.shape_cast %26 : vector<128xf32> to vector<1x128xf32>
    %c0_12 = arith.constant 0 : index
    %c0_13 = arith.constant 0 : index
    %c0_14 = arith.constant 0 : index
    %28 = vector.load %arg6[%c0_12, %c0_13, %c0_14] : memref<1x2x128xf32, #tpu.memory_space<vmem>>, vector<1x1x128xf32>
    %29 = vector.shape_cast %28 : vector<1x1x128xf32> to vector<1x128xf32>
    %30 = vector.shape_cast %27 : vector<1x128xf32> to vector<1x1x128xf32>
    tpu.vector_store %arg6[%c0_12, %c0_13, %c0_14], %30 {strides = array<i32>} : memref<1x2x128xf32, #tpu.memory_space<vmem>>, vector<1x1x128xf32>,
    %cst_15 = arith.constant 0.000000e+00 : f32
    %cst_16 = arith.constant 3.000000e+38 : f32
    %31 = arith.subf %cst_15, %cst_16 : f32
    %32 = vector.shape_cast %21 : vector<64x1xi1> to vector<64x1xi1>
    %33 = vector.broadcast %32 : vector<64x1xi1> to vector<64x128xi1>
    %34 = vector.broadcast %31 : f32 to vector<64x128xf32>
    %35 = arith.select %33, %15, %34 : vector<64x128xi1>, vector<64x128xf32>
    %cst_17 = arith.constant dense<0xFF800000> : vector<128xf32>
    %36 = vector.multi_reduction <maximumf>, %35, %cst_17 [0] : vector<64x128xf32> to vector<128xf32>
    %37 = vector.shape_cast %36 : vector<128xf32> to vector<1x128xf32>
    %c0_18 = arith.constant 0 : index
    %c1 = arith.constant 1 : index
    %c0_19 = arith.constant 0 : index
    %38 = vector.load %arg6[%c0_18, %c1, %c0_19] : memref<1x2x128xf32, #tpu.memory_space<vmem>>, vector<1x1x128xf32>
    %39 = vector.shape_cast %38 : vector<1x1x128xf32> to vector<1x128xf32>
    %40 = vector.shape_cast %37 : vector<1x128xf32> to vector<1x1x128xf32>
    tpu.vector_store %arg6[%c0_18, %c1, %c0_19], %40 {strides = array<i32>} : memref<1x2x128xf32, #tpu.memory_space<vmem>>, vector<1x1x128xf32>,
    return
  }
  func.func @transform_0(%arg0: i32) -> (i32, i32) {
    %c0_i32 = arith.constant 0 : i32
    %c0_i32_0 = arith.constant 0 : i32
    return %arg0, %c0_i32 : i32, i32
  }
  func.func @transform_1(%arg0: i32) -> (i32, i32) {
    %c0_i32 = arith.constant 0 : i32
    %c0_i32_0 = arith.constant 0 : i32
    %c0_i32_1 = arith.constant 0 : i32
    return %c0_i32, %c0_i32_0 : i32, i32
  }
  func.func @transform_2(%arg0: i32) -> (i32, i32) {
    %c0_i32 = arith.constant 0 : i32
    %c0_i32_0 = arith.constant 0 : i32
    %c0_i32_1 = arith.constant 0 : i32
    return %c0_i32, %c0_i32_0 : i32, i32
  }
  func.func @transform_3(%arg0: i32) -> (i32, i32) {
    %c0_i32 = arith.constant 0 : i32
    %c0_i32_0 = arith.constant 0 : i32
    %c0_i32_1 = arith.constant 0 : i32
    return %c0_i32, %c0_i32_0 : i32, i32
  }
  func.func @transform_4(%arg0: i32) -> (i32, i32) {
    %c0_i32 = arith.constant 0 : i32
    %c0_i32_0 = arith.constant 0 : i32
    return %arg0, %c0_i32 : i32, i32
  }
  func.func @transform_5(%arg0: i32) -> (i32, i32, i32) {
    %c0_i32 = arith.constant 0 : i32
    %c0_i32_0 = arith.constant 0 : i32
    %c0_i32_1 = arith.constant 0 : i32
    return %arg0, %c0_i32, %c0_i32_0 : i32, i32, i32
  }
}

module attributes {stable_mosaic.version = 11 : i64} {
  func.func @kernel(%arg0: i32, %arg1: memref<64x128xbf16, #tpu.memory_space<vmem>>, %arg2: memref<2xf32, #tpu.memory_space<smem>>, %arg3: memref<128x128xbf16, #tpu.memory_space<vmem>>, %arg4: memref<64x128xi8, #tpu.memory_space<vmem>>, %arg5: memref<1x2x128xf32, #tpu.memory_space<vmem>>) attributes {dimension_semantics = [#tpu.dimension_semantics<parallel>], iteration_bounds = array<i64: 2>, scalar_prefetch = 0 : i64, scratch_operands = 0 : i64, tpu.core_type = #tpu.core_type<tc>, window_params = [{transform_indices = @transform_0, window_bounds = array<i64: 64, 128>}, {transform_indices = @transform_1, window_bounds = array<i64: 2>}, {pipeline_mode = #tpu.pipeline_mode<synchronous>, transform_indices = @transform_2, window_bounds = array<i64: 128, 128>}, {transform_indices = @transform_3, window_bounds = array<i64: 64, 128>}, {transform_indices = @transform_4, window_bounds = array<i64: 1, 2, 128>}]} {
    %c0 = arith.constant 0 : index
    %c0_0 = arith.constant 0 : index
    %0 = vector.load %arg1[%c0, %c0_0] : memref<64x128xbf16, #tpu.memory_space<vmem>>, vector<64x128xbf16>
    %1 = arith.extf %0 : vector<64x128xbf16> to vector<64x128xf32>
    %c0_1 = arith.constant 0 : index
    %2 = memref.load %arg2[%c0_1] : memref<2xf32, #tpu.memory_space<smem>>
    %3 = vector.broadcast %2 : f32 to vector<64x128xf32>
    %4 = arith.mulf %1, %3 : vector<64x128xf32>
    %c1 = arith.constant 1 : index
    %5 = memref.load %arg2[%c1] : memref<2xf32, #tpu.memory_space<smem>>
    %6 = vector.broadcast %5 : f32 to vector<64x128xf32>
    %7 = arith.addf %4, %6 : vector<64x128xf32>
    %8 = math.roundeven %7 : vector<64x128xf32>
    %cst = arith.constant -1.280000e+02 : f32
    %cst_2 = arith.constant 1.270000e+02 : f32
    %9 = vector.broadcast %cst : f32 to vector<64x128xf32>
    %10 = arith.maximumf %9, %8 : vector<64x128xf32>
    %11 = vector.broadcast %cst_2 : f32 to vector<64x128xf32>
    %12 = arith.minimumf %11, %10 : vector<64x128xf32>
    %13 = arith.fptosi %12 : vector<64x128xf32> to vector<64x128xi8>
    %c0_3 = arith.constant 0 : index
    %c0_4 = arith.constant 0 : index
    %14 = vector.load %arg4[%c0_3, %c0_4] : memref<64x128xi8, #tpu.memory_space<vmem>>, vector<64x128xi8>
    tpu.vector_store %arg4[%c0_3, %c0_4], %13 {strides = array<i32>} : memref<64x128xi8, #tpu.memory_space<vmem>>, vector<64x128xi8>,
    %15 = arith.truncf %12 : vector<64x128xf32> to vector<64x128xbf16>
    %c0_5 = arith.constant 0 : index
    %c0_6 = arith.constant 0 : index
    %16 = vector.load %arg3[%c0_5, %c0_6] : memref<128x128xbf16, #tpu.memory_space<vmem>>, vector<128x128xbf16>
    %cst_7 = arith.constant dense<0.000000e+00> : vector<64x128xf32>
    %17 = tpu.matmul %15, %16, %cst_7 {dimension_numbers = #tpu.dot_dimension_numbers<[1], [0], [0], [1], [0, 0, 1, 1], [], []>} : vector<64x128xbf16>, vector<128x128xbf16>, vector<64x128xf32> -> vector<64x128xf32>
    %18 = tpu.iota {dimensions = array<i32: 0>} : vector<64x1xi32>
    %c64_i32 = arith.constant 64 : i32
    %19 = arith.muli %arg0, %c64_i32 : i32
    %20 = vector.broadcast %19 : i32 to vector<64x1xi32>
    %21 = arith.addi %18, %20 : vector<64x1xi32>
    %c128_i32 = arith.constant 128 : i32
    %22 = vector.broadcast %c128_i32 : i32 to vector<64x1xi32>
    %23 = arith.cmpi slt, %21, %22 : vector<64x1xi32>
    %24 = arith.extui %23 : vector<64x1xi1> to vector<64x1xi32>
    %25 = arith.sitofp %24 : vector<64x1xi32> to vector<64x1xf32>
    %26 = vector.broadcast %25 : vector<64x1xf32> to vector<64x128xf32>
    %27 = arith.mulf %17, %26 : vector<64x128xf32>
    %cst_8 = arith.constant dense<0.000000e+00> : vector<128xf32>
    %28 = vector.multi_reduction <add>, %27, %cst_8 [0] : vector<64x128xf32> to vector<128xf32>
    %29 = vector.shape_cast %28 : vector<128xf32> to vector<1x128xf32>
    %c0_9 = arith.constant 0 : index
    %c0_10 = arith.constant 0 : index
    %c0_11 = arith.constant 0 : index
    %30 = vector.load %arg5[%c0_9, %c0_10, %c0_11] : memref<1x2x128xf32, #tpu.memory_space<vmem>>, vector<1x1x128xf32>
    %31 = vector.shape_cast %30 : vector<1x1x128xf32> to vector<1x128xf32>
    %32 = vector.shape_cast %29 : vector<1x128xf32> to vector<1x1x128xf32>
    tpu.vector_store %arg5[%c0_9, %c0_10, %c0_11], %32 {strides = array<i32>} : memref<1x2x128xf32, #tpu.memory_space<vmem>>, vector<1x1x128xf32>,
    %33 = arith.mulf %27, %17 : vector<64x128xf32>
    %cst_12 = arith.constant dense<0.000000e+00> : vector<128xf32>
    %34 = vector.multi_reduction <add>, %33, %cst_12 [0] : vector<64x128xf32> to vector<128xf32>
    %35 = vector.shape_cast %34 : vector<128xf32> to vector<1x128xf32>
    %c0_13 = arith.constant 0 : index
    %c1_14 = arith.constant 1 : index
    %c0_15 = arith.constant 0 : index
    %36 = vector.load %arg5[%c0_13, %c1_14, %c0_15] : memref<1x2x128xf32, #tpu.memory_space<vmem>>, vector<1x1x128xf32>
    %37 = vector.shape_cast %36 : vector<1x1x128xf32> to vector<1x128xf32>
    %38 = vector.shape_cast %35 : vector<1x128xf32> to vector<1x1x128xf32>
    tpu.vector_store %arg5[%c0_13, %c1_14, %c0_15], %38 {strides = array<i32>} : memref<1x2x128xf32, #tpu.memory_space<vmem>>, vector<1x1x128xf32>,
    return
  }
  func.func @transform_0(%arg0: i32) -> (i32, i32) {
    %c0_i32 = arith.constant 0 : i32
    %c0_i32_0 = arith.constant 0 : i32
    return %arg0, %c0_i32 : i32, i32
  }
  func.func @transform_1(%arg0: i32) -> i32 {
    %c0_i32 = arith.constant 0 : i32
    %c0_i32_0 = arith.constant 0 : i32
    return %c0_i32 : i32
  }
  func.func @transform_2(%arg0: i32) -> (i32, i32) {
    %c0_i32 = arith.constant 0 : i32
    %c0_i32_0 = arith.constant 0 : i32
    %c0_i32_1 = arith.constant 0 : i32
    return %c0_i32, %c0_i32_0 : i32, i32
  }
  func.func @transform_3(%arg0: i32) -> (i32, i32) {
    %c0_i32 = arith.constant 0 : i32
    %c0_i32_0 = arith.constant 0 : i32
    return %arg0, %c0_i32 : i32, i32
  }
  func.func @transform_4(%arg0: i32) -> (i32, i32, i32) {
    %c0_i32 = arith.constant 0 : i32
    %c0_i32_0 = arith.constant 0 : i32
    %c0_i32_1 = arith.constant 0 : i32
    return %arg0, %c0_i32, %c0_i32_0 : i32, i32, i32
  }
}

module attributes {stable_mosaic.version = 11 : i64} {
  func.func @kernel(%arg0: i32, %arg1: memref<64x128xi8, #tpu.memory_space<vmem>>, %arg2: memref<128x128xbf16, #tpu.memory_space<vmem>>, %arg3: memref<1x128xf32, #tpu.memory_space<vmem>>, %arg4: memref<1x128xf32, #tpu.memory_space<vmem>>, %arg5: memref<64x128xbf16, #tpu.memory_space<vmem>>, %arg6: memref<1x2x128xf32, #tpu.memory_space<vmem>>) attributes {dimension_semantics = [#tpu.dimension_semantics<parallel>], iteration_bounds = array<i64: 2>, scalar_prefetch = 0 : i64, scratch_operands = 0 : i64, tpu.core_type = #tpu.core_type<tc>, window_params = [{transform_indices = @transform_0, window_bounds = array<i64: 64, 128>}, {pipeline_mode = #tpu.pipeline_mode<synchronous>, transform_indices = @transform_1, window_bounds = array<i64: 128, 128>}, {pipeline_mode = #tpu.pipeline_mode<synchronous>, transform_indices = @transform_2, window_bounds = array<i64: 1, 128>}, {pipeline_mode = #tpu.pipeline_mode<synchronous>, transform_indices = @transform_3, window_bounds = array<i64: 1, 128>}, {transform_indices = @transform_4, window_bounds = array<i64: 64, 128>}, {transform_indices = @transform_5, window_bounds = array<i64: 1, 2, 128>}]} {
    %c0 = arith.constant 0 : index
    %c0_0 = arith.constant 0 : index
    %0 = vector.load %arg1[%c0, %c0_0] : memref<64x128xi8, #tpu.memory_space<vmem>>, vector<64x128xi8>
    %1 = arith.sitofp %0 : vector<64x128xi8> to vector<64x128xf32>
    %2 = arith.truncf %1 : vector<64x128xf32> to vector<64x128xbf16>
    %c0_1 = arith.constant 0 : index
    %c0_2 = arith.constant 0 : index
    %3 = vector.load %arg2[%c0_1, %c0_2] : memref<128x128xbf16, #tpu.memory_space<vmem>>, vector<128x128xbf16>
    %cst = arith.constant dense<0.000000e+00> : vector<64x128xf32>
    %4 = tpu.matmul %2, %3, %cst {dimension_numbers = #tpu.dot_dimension_numbers<[1], [0], [0], [1], [0, 0, 1, 1], [], []>} : vector<64x128xbf16>, vector<128x128xbf16>, vector<64x128xf32> -> vector<64x128xf32>
    %c0_3 = arith.constant 0 : index
    %c0_4 = arith.constant 0 : index
    %5 = vector.load %arg3[%c0_3, %c0_4] : memref<1x128xf32, #tpu.memory_space<vmem>>, vector<1x128xf32>
    %6 = vector.broadcast %5 : vector<1x128xf32> to vector<64x128xf32>
    %7 = arith.mulf %4, %6 : vector<64x128xf32>
    %c0_5 = arith.constant 0 : index
    %c0_6 = arith.constant 0 : index
    %8 = vector.load %arg4[%c0_5, %c0_6] : memref<1x128xf32, #tpu.memory_space<vmem>>, vector<1x128xf32>
    %9 = vector.broadcast %8 : vector<1x128xf32> to vector<64x128xf32>
    %10 = arith.addf %7, %9 : vector<64x128xf32>
    %cst_7 = arith.constant 0.000000e+00 : f32
    %11 = vector.broadcast %cst_7 : f32 to vector<64x128xf32>
    %12 = arith.maximumf %10, %11 : vector<64x128xf32>
    %13 = arith.truncf %12 : vector<64x128xf32> to vector<64x128xbf16>
    %c0_8 = arith.constant 0 : index
    %c0_9 = arith.constant 0 : index
    %14 = vector.load %arg5[%c0_8, %c0_9] : memref<64x128xbf16, #tpu.memory_space<vmem>>, vector<64x128xbf16>
    tpu.vector_store %arg5[%c0_8, %c0_9], %13 {strides = array<i32>} : memref<64x128xbf16, #tpu.memory_space<vmem>>, vector<64x128xbf16>,
    %15 = arith.extf %13 : vector<64x128xbf16> to vector<64x128xf32>
    %16 = tpu.iota {dimensions = array<i32: 0>} : vector<64x1xi32>
    %c64_i32 = arith.constant 64 : i32
    %17 = arith.muli %arg0, %c64_i32 : i32
    %18 = vector.broadcast %17 : i32 to vector<64x1xi32>
    %19 = arith.addi %16, %18 : vector<64x1xi32>
    %c128_i32 = arith.constant 128 : i32
    %20 = vector.broadcast %c128_i32 : i32 to vector<64x1xi32>
    %21 = arith.cmpi slt, %19, %20 : vector<64x1xi32>
    %cst_10 = arith.constant 3.000000e+38 : f32
    %22 = vector.shape_cast %21 : vector<64x1xi1> to vector<64x1xi1>
    %23 = vector.broadcast %22 : vector<64x1xi1> to vector<64x128xi1>
    %24 = vector.broadcast %cst_10 : f32 to vector<64x128xf32>
    %25 = arith.select %23, %15, %24 : vector<64x128xi1>, vector<64x128xf32>
    %cst_11 = arith.constant dense<0x7F800000> : vector<128xf32>
    %26 = vector.multi_reduction <minimumf>, %25, %cst_11 [0] : vector<64x128xf32> to vector<128xf32>
    %27 = vector.shape_cast %26 : vector<128xf32> to vector<1x128xf32>
    %c0_12 = arith.constant 0 : index
    %c0_13 = arith.constant 0 : index
    %c0_14 = arith.constant 0 : index
    %28 = vector.load %arg6[%c0_12, %c0_13, %c0_14] : memref<1x2x128xf32, #tpu.memory_space<vmem>>, vector<1x1x128xf32>
    %29 = vector.shape_cast %28 : vector<1x1x128xf32> to vector<1x128xf32>
    %30 = vector.shape_cast %27 : vector<1x128xf32> to vector<1x1x128xf32>
    tpu.vector_store %arg6[%c0_12, %c0_13, %c0_14], %30 {strides = array<i32>} : memref<1x2x128xf32, #tpu.memory_space<vmem>>, vector<1x1x128xf32>,
    %cst_15 = arith.constant 0.000000e+00 : f32
    %cst_16 = arith.constant 3.000000e+38 : f32
    %31 = arith.subf %cst_15, %cst_16 : f32
    %32 = vector.shape_cast %21 : vector<64x1xi1> to vector<64x1xi1>
    %33 = vector.broadcast %32 : vector<64x1xi1> to vector<64x128xi1>
    %34 = vector.broadcast %31 : f32 to vector<64x128xf32>
    %35 = arith.select %33, %15, %34 : vector<64x128xi1>, vector<64x128xf32>
    %cst_17 = arith.constant dense<0xFF800000> : vector<128xf32>
    %36 = vector.multi_reduction <maximumf>, %35, %cst_17 [0] : vector<64x128xf32> to vector<128xf32>
    %37 = vector.shape_cast %36 : vector<128xf32> to vector<1x128xf32>
    %c0_18 = arith.constant 0 : index
    %c1 = arith.constant 1 : index
    %c0_19 = arith.constant 0 : index
    %38 = vector.load %arg6[%c0_18, %c1, %c0_19] : memref<1x2x128xf32, #tpu.memory_space<vmem>>, vector<1x1x128xf32>
    %39 = vector.shape_cast %38 : vector<1x1x128xf32> to vector<1x128xf32>
    %40 = vector.shape_cast %37 : vector<1x128xf32> to vector<1x1x128xf32>
    tpu.vector_store %arg6[%c0_18, %c1, %c0_19], %40 {strides = array<i32>} : memref<1x2x128xf32, #tpu.memory_space<vmem>>, vector<1x1x128xf32>,
    return
  }
  func.func @transform_0(%arg0: i32) -> (i32, i32) {
    %c0_i32 = arith.constant 0 : i32
    %c0_i32_0 = arith.constant 0 : i32
    return %arg0, %c0_i32 : i32, i32
  }
  func.func @transform_1(%arg0: i32) -> (i32, i32) {
    %c0_i32 = arith.constant 0 : i32
    %c0_i32_0 = arith.constant 0 : i32
    %c0_i32_1 = arith.constant 0 : i32
    return %c0_i32, %c0_i32_0 : i32, i32
  }
  func.func @transform_2(%arg0: i32) -> (i32, i32) {
    %c0_i32 = arith.constant 0 : i32
    %c0_i32_0 = arith.constant 0 : i32
    %c0_i32_1 = arith.constant 0 : i32
    return %c0_i32, %c0_i32_0 : i32, i32
  }
  func.func @transform_3(%arg0: i32) -> (i32, i32) {
    %c0_i32 = arith.constant 0 : i32
    %c0_i32_0 = arith.constant 0 : i32
    %c0_i32_1 = arith.constant 0 : i32
    return %c0_i32, %c0_i32_0 : i32, i32
  }
  func.func @transform_4(%arg0: i32) -> (i32, i32) {
    %c0_i32 = arith.constant 0 : i32
    %c0_i32_0 = arith.constant 0 : i32
    return %arg0, %c0_i32 : i32, i32
  }
  func.func @transform_5(%arg0: i32) -> (i32, i32, i32) {
    %c0_i32 = arith.constant 0 : i32
    %c0_i32_0 = arith.constant 0 : i32
    %c0_i32_1 = arith.constant 0 : i32
    return %arg0, %c0_i32, %c0_i32_0 : i32, i32, i32
  }
}

module attributes {stable_mosaic.version = 11 : i64} {
  func.func @kernel(%arg0: i32, %arg1: memref<64x128xi8, #tpu.memory_space<vmem>>, %arg2: memref<128x128xbf16, #tpu.memory_space<vmem>>, %arg3: memref<1x128xf32, #tpu.memory_space<vmem>>, %arg4: memref<1x128xf32, #tpu.memory_space<vmem>>, %arg5: memref<8x128xf32, #tpu.memory_space<vmem>>) attributes {dimension_semantics = [#tpu.dimension_semantics<parallel>], iteration_bounds = array<i64: 2>, scalar_prefetch = 0 : i64, scratch_operands = 0 : i64, tpu.core_type = #tpu.core_type<tc>, window_params = [{transform_indices = @transform_0, window_bounds = array<i64: 64, 128>}, {pipeline_mode = #tpu.pipeline_mode<synchronous>, transform_indices = @transform_1, window_bounds = array<i64: 128, 128>}, {pipeline_mode = #tpu.pipeline_mode<synchronous>, transform_indices = @transform_2, window_bounds = array<i64: 1, 128>}, {pipeline_mode = #tpu.pipeline_mode<synchronous>, transform_indices = @transform_3, window_bounds = array<i64: 1, 128>}, {transform_indices = @transform_4, window_bounds = array<i64: 8, 128>}]} {
    %c0 = arith.constant 0 : index
    %c0_0 = arith.constant 0 : index
    %0 = vector.load %arg1[%c0, %c0_0] : memref<64x128xi8, #tpu.memory_space<vmem>>, vector<64x128xi8>
    %1 = arith.sitofp %0 : vector<64x128xi8> to vector<64x128xf32>
    %2 = arith.truncf %1 : vector<64x128xf32> to vector<64x128xbf16>
    %c0_1 = arith.constant 0 : index
    %c0_2 = arith.constant 0 : index
    %3 = vector.load %arg2[%c0_1, %c0_2] : memref<128x128xbf16, #tpu.memory_space<vmem>>, vector<128x128xbf16>
    %cst = arith.constant dense<0.000000e+00> : vector<64x128xf32>
    %4 = tpu.matmul %2, %3, %cst {dimension_numbers = #tpu.dot_dimension_numbers<[1], [0], [0], [1], [0, 0, 1, 1], [], []>} : vector<64x128xbf16>, vector<128x128xbf16>, vector<64x128xf32> -> vector<64x128xf32>
    %c0_3 = arith.constant 0 : index
    %c0_4 = arith.constant 0 : index
    %5 = vector.load %arg3[%c0_3, %c0_4] : memref<1x128xf32, #tpu.memory_space<vmem>>, vector<1x128xf32>
    %6 = vector.broadcast %5 : vector<1x128xf32> to vector<64x128xf32>
    %7 = arith.mulf %4, %6 : vector<64x128xf32>
    %c0_5 = arith.constant 0 : index
    %c0_6 = arith.constant 0 : index
    %8 = vector.load %arg4[%c0_5, %c0_6] : memref<1x128xf32, #tpu.memory_space<vmem>>, vector<1x128xf32>
    %9 = vector.broadcast %8 : vector<1x128xf32> to vector<64x128xf32>
    %10 = arith.addf %7, %9 : vector<64x128xf32>
    %cst_7 = arith.constant 0.000000e+00 : f32
    %11 = vector.broadcast %cst_7 : f32 to vector<64x128xf32>
    %12 = arith.maximumf %10, %11 : vector<64x128xf32>
    %13 = vector.shape_cast %12 : vector<64x128xf32> to vector<8x8x128xf32>
    %cst_8 = arith.constant dense<0xFF800000> : vector<8x128xf32>
    %14 = vector.multi_reduction <maximumf>, %13, %cst_8 [1] : vector<8x8x128xf32> to vector<8x128xf32>
    %c0_9 = arith.constant 0 : index
    %c0_10 = arith.constant 0 : index
    %15 = vector.load %arg5[%c0_9, %c0_10] : memref<8x128xf32, #tpu.memory_space<vmem>>, vector<8x128xf32>
    tpu.vector_store %arg5[%c0_9, %c0_10], %14 {strides = array<i32>} : memref<8x128xf32, #tpu.memory_space<vmem>>, vector<8x128xf32>,
    return
  }
  func.func @transform_0(%arg0: i32) -> (i32, i32) {
    %c0_i32 = arith.constant 0 : i32
    %c0_i32_0 = arith.constant 0 : i32
    return %arg0, %c0_i32 : i32, i32
  }
  func.func @transform_1(%arg0: i32) -> (i32, i32) {
    %c0_i32 = arith.constant 0 : i32
    %c0_i32_0 = arith.constant 0 : i32
    %c0_i32_1 = arith.constant 0 : i32
    return %c0_i32, %c0_i32_0 : i32, i32
  }
  func.func @transform_2(%arg0: i32) -> (i32, i32) {
    %c0_i32 = arith.constant 0 : i32
    %c0_i32_0 = arith.constant 0 : i32
    %c0_i32_1 = arith.constant 0 : i32
    return %c0_i32, %c0_i32_0 : i32, i32
  }
  func.func @transform_3(%arg0: i32) -> (i32, i32) {
    %c0_i32 = arith.constant 0 : i32
    %c0_i32_0 = arith.constant 0 : i32
    %c0_i32_1 = arith.constant 0 : i32
    return %c0_i32, %c0_i32_0 : i32, i32
  }
  func.func @transform_4(%arg0: i32) -> (i32, i32) {
    %c0_i32 = arith.constant 0 : i32
    %c0_i32_0 = arith.constant 0 : i32
    return %arg0, %c0_i32 : i32, i32
  }
}

</mosaic_0001>

<bundles_post_ra>
// kernel: custom-call.8
= control target key start
LH: loop header
LB: loop body
LE: loop exit
PB: predicated region body
PF: predicated region fallthrough
CT: control target
= control target key end

     0   :  { %s6_s0 = inlined_call_operand.vmem [shape: f32[2,32], index: 0, kind: output, shape index: {}]  }

// kernel: sub.5
= control target key start
LH: loop header
LB: loop body
LE: loop exit
PB: predicated region body
PF: predicated region fallthrough
CT: control target
= control target key end

     0   :  { %s34_s0 = inlined_call_operand.vmem [shape: f32[128,3], index: 0, kind: input, shape index: {}]   ;;  %s35_s1 = inlined_call_operand.vmem [shape: f32[128,3], index: 1, kind: input, shape index: {}]   ;;  %s36_s2 = inlined_call_operand.vmem [shape: f32[128,3], index: 2, kind: output, shape index: {}]  }
   0x1   :  { %v3_v0 = vld [vmem:[%s34_s0] sm:$0x7] }
   0x2   :  { %v4_v1 = vld [vmem:[%s35_s1] sm:$0x7] }
   0x3   :  { %v7_v2 = vsub.f32 %v3_v0, %v4_v1 }
   0x5   :  { %9 = vst [vmem:[%s36_s2] sm:$0xf] %v7_v2 }

// kernel: _lambda_.7
= control target key start
LH: loop header
LB: loop body
LE: loop exit
PB: predicated region body
PF: predicated region fallthrough
CT: control target
= control target key end

     0   :  { %s656_s18 = smov 0   ;;  %s740_s0 = inlined_call_operand.vmem [shape: bf16[128,8], index: 0, kind: input, shape index: {}]   ;;  %s741_s1 = inlined_call_operand.vmem [shape: bf16[8,128], index: 1, kind: input, shape index: {}]   ;;  %s742_s2 = inlined_call_operand.vmem [shape: f32[1,128], index: 2, kind: input, shape index: {}]   ;;  %s743_s3 = inlined_call_operand.vmem [shape: f32[1,128], index: 3, kind: input, shape index: {}]   ;;  %s744_s4 = inlined_call_operand.vmem [shape: bf16[128,128], index: 4, kind: output, shape index: {0}]   ;;  %s745_s5 = inlined_call_operand.vmem [shape: f32[2,2,128], index: 5, kind: output, shape index: {1}]  }
   0x1 LB: > { %s662_s19 = sadd.s32 4294967295, %s624_s18   ;;  %p549_p0 = scmp.ge.s32.totalorder %s624_s18, 1  ;;  %s624_s18 = sphi %s656_s18, %s16_s18  }
   0x2   : > { %p191_p1 = scmp.lt.s32.totalorder %s624_s18, 3 }
   0x4   : > { %p192_p2 = pnand %p549_p0, %p191_p1 }
   0x5   : > { %s550_s22 = sshll.u32 (!%p192_p2), %s662_s19, 3  ;;  %s575_s6 = sshll.u32 (!%p192_p2), %s662_s19, 6 }
   0x6   : > { %195 = sbr.rel (%p192_p2) target bundleno = 188 (0xbc), region = 36  ;;  %p224_p3 = scmp.lt.s32.totalorder (!%p192_p2), %s550_s22, 15 }
   0x7   : > { %p235_p4 = scmp.lt.s32.totalorder (!%p192_p2), %s662_s19, 1 }
   0xb   : > { %v248_v0 = vld [vmem:[%s741_s1] sm:$0xf]  ;;  %vm282_vm0 = vcmask 1043456   ;;  %s747_s22 = smov (!%p224_p3, %s550_s22), 15  ;;  %vm269_vm1 = vcmask 64512   ;;  %v371_v11 = vlaneseq  ;;  %v381_v27 = vstv %s575_s6  ;;  %s749_s19 = smov (!%p235_p4, %s662_s19), 1 }
   0xc   : > { %v284_v1 = vsel %vm282_vm0, %v248_v0, 0  ;;  %s551_s23 = sshll.u32 %s747_s22, 2  ;;  %v616_v6 = vld [vmem:[%s742_s2] ss:$0 sm:$0xff]  ;;  %s554_s10 = sshll.u32 %s749_s19, 1 }
   0xd   : > { %293 = vmatpush.bf16.msra.mxu0 %v284_v1  ;;  %605 = vmatpush.bf16.msra.mxu1 %v284_v1  ;;  %s227_s26 = scalar_lea.vmem %s740_s0, %s551_s23  ;;  %v684_v10 = vld [vmem:[%s743_s3] ss:$0 sm:$0xff]  ;;  %v372_v14 = vshrl.u32 %v371_v11, 7  ;;  %s702_s9 = scalar_lea.vmem %s744_s4, %s551_s23 }
   0xe   : > { %606 = vmatpush.bf16.msra.mxu2 %v284_v1  ;;  %607 = vmatpush.bf16.msra.mxu3 %v284_v1  ;;  %v578_v2 = vld [vmem:[%s227_s26] sm:$0xff]  ;;  %v579_v3 = vld [vmem:[%s227_s26 + $0x8] sm:$0xff]  ;;  %v580_v4 = vld [vmem:[%s227_s26 + $0x10] sm:$0xff]  ;;  %s238_s13 = scalar_lea.vmem %s745_s5, %s554_s10 }
   0xf   : > { %v581_v5 = vld [vmem:[%s227_s26 + $0x18] sm:$0xff]  ;;  %v374_v28 = vadd.s32 16, %v372_v14  ;;  %v376_v29 = vadd.s32 32, %v372_v14  ;;  %v378_v33 = vadd.s32 48, %v372_v14  ;;  %v373_v36 = vadd.s32 8, %v372_v14 }
  0x10   : > { %571 = vmatmul.msk.bf16.vlgmr.msra.gmra.mxu0 %vm269_vm1, %v578_v2  ;;  %572 = vmatmul.msk.bf16.vlgmr.msra.gmra.mxu1 %vm269_vm1, %v579_v3  ;;  %v375_v37 = vadd.s32 24, %v372_v14  ;;  %v377_v38 = vadd.s32 40, %v372_v14  ;;  %v379_v42 = vadd.s32 56, %v372_v14  ;;  %v382_v43 = vadd.s32 %v381_v27, %v372_v14 }
  0x11   : > { %573 = vmatmul.msk.bf16.vlgmr.msra.gmra.mxu2 %vm269_vm1, %v580_v4  ;;  %574 = vmatmul.msk.bf16.vlgmr.msra.gmra.mxu3 %vm269_vm1, %v581_v5  ;;  %v384_v44 = vadd.s32 %v381_v27, %v374_v28  ;;  %v386_v45 = vadd.s32 %v381_v27, %v376_v29  ;;  %v388_v51 = vadd.s32 %v381_v27, %v378_v33 }
  0x12   : > { %v383_v53 = vadd.s32 %v381_v27, %v373_v36  ;;  %v385_v54 = vadd.s32 %v381_v27, %v375_v37  ;;  %v387_v59 = vadd.s32 %v381_v27, %v377_v38  ;;  %v389_v60 = vadd.s32 %v381_v27, %v379_v42 }
  0x13   : > { %vm390_vm2 = vcmp.lt.s32.totalorder %v382_v43, 128  ;;  %vm392_vm3 = vcmp.lt.s32.totalorder %v384_v44, 128  ;;  %vm394_vm4 = vcmp.lt.s32.totalorder %v386_v45, 128  ;;  %vm396_vm5 = vcmp.lt.s32.totalorder %v388_v51, 128 }
  0x14   : > { %vm391_vm6 = vcmp.lt.s32.totalorder %v383_v53, 128  ;;  %vm393_vm7 = vcmp.lt.s32.totalorder %v385_v54, 128  ;;  %vm395_vm8 = vcmp.lt.s32.totalorder %v387_v59, 128  ;;  %vm397_vm9 = vcmp.lt.s32.totalorder %v389_v60, 128 }
  0x8d   : > { %v295_v7 = vpop.f32.mrf.mxu0  ;;  %v300_v8 = vpop.f32.mrf.mxu1 }
  0x8e   : > { %v319_v9 = vmul.f32 %v616_v6, %v295_v7  ;;  %v321_v12 = vmul.f32 %v616_v6, %v300_v8 }
  0x90   : > { %v331_v13 = vadd.f32 %v684_v10, %v319_v9  ;;  %v333_v17 = vadd.f32 %v684_v10, %v321_v12 }
  0x92   : > { %v339_v24 = vmax.f32 %v331_v13, 0.0  ;;  %v341_v31 = vmax.f32 %v333_v17, 0.0 }
  0x94   : > { %v305_v15 = vpop.f32.mrf.mxu2  ;;  %v310_v16 = vpop.f32.mrf.mxu3  ;;  %v347_v39 = vpack.c.bf16 %v339_v24, %v339_v24  ;;  %v349_v49 = vpack.c.bf16 %v341_v31, %v341_v31 }
  0x95   : > { %v323_v18 = vmul.f32 %v616_v6, %v305_v15  ;;  %v325_v19 = vmul.f32 %v616_v6, %v310_v16  ;;  %v297_v20 = vpop.f32.mrf.mxu0  ;;  %v302_v21 = vpop.f32.mrf.mxu1 }
  0x96   : > { %v320_v22 = vmul.f32 %v616_v6, %v297_v20  ;;  %v322_v23 = vmul.f32 %v616_v6, %v302_v21  ;;  %v363_v57 = vunpack.c.l.bf16 %v347_v39  ;;  %v365_v62 = vunpack.c.l.bf16 %v349_v49 }
  0x97   : > { %v335_v25 = vadd.f32 %v684_v10, %v323_v18  ;;  %v337_v26 = vadd.f32 %v684_v10, %v325_v19 }
  0x98   : > { %v332_v30 = vadd.f32 %v684_v10, %v320_v22  ;;  %v334_v34 = vadd.f32 %v684_v10, %v322_v23  ;;  %v414_v3 = vsel %vm390_vm2, %v363_v57, 3e+38  ;;  %v436_v5 = vsel %vm390_vm2, %v363_v57, -3e+38 }
  0x99   : > { %v692_v32 = vmax.f32 %v335_v25, 0.0  ;;  %v695_v40 = vmax.f32 %v337_v26, 0.0  ;;  %v416_v9 = vsel %vm392_vm3, %v365_v62, 3e+38  ;;  %v438_v17 = vsel %vm392_vm3, %v365_v62, -3e+38 }
  0x9a   : > { %v340_v35 = vmax.f32 %v332_v30, 0.0  ;;  %v342_v41 = vmax.f32 %v334_v34, 0.0 }
  0x9b   : > { %v351_v50 = vpack.c.bf16 %v692_v32, %v692_v32  ;;  %v353_v58 = vpack.c.bf16 %v695_v40, %v695_v40 }
  0x9c   : > { %v585_v46 = vpack.c.bf16 %v340_v35, %v339_v24  ;;  %v307_v47 = vpop.f32.mrf.mxu2  ;;  %v312_v48 = vpop.f32.mrf.mxu3  ;;  %v590_v52 = vpack.c.bf16 %v342_v41, %v341_v31  ;;  %v348_v61 = vpack.c.bf16 %v340_v35, %v340_v35  ;;  %v350_v0 = vpack.c.bf16 %v342_v41, %v342_v41 }
  0x9d   : > { %v324_v55 = vmul.f32 %v616_v6, %v307_v47  ;;  %v326_v56 = vmul.f32 %v616_v6, %v312_v48  ;;  %v367_v63 = vunpack.c.l.bf16 %v351_v50  ;;  %v369_v4 = vunpack.c.l.bf16 %v353_v58 }
  0x9e   : > { %586 = vst [vmem:[%s702_s9] sm:$0xff] %v585_v46   ;;  %v364_v6 = vunpack.c.l.bf16 %v348_v61  ;;  %v366_v13 = vunpack.c.l.bf16 %v350_v0 }
  0x9f   : > { %602 = vst [vmem:[%s702_s9 + $0x8] sm:$0xff] %v590_v52   ;;  %v336_v1 = vadd.f32 %v684_v10, %v324_v55  ;;  %v338_v2 = vadd.f32 %v684_v10, %v326_v56  ;;  %v418_v11 = vsel %vm394_vm4, %v367_v63, 3e+38  ;;  %v440_v12 = vsel %vm394_vm4, %v367_v63, -3e+38 }
  0xa0   : > { %v420_v18 = vsel %vm396_vm5, %v369_v4, 3e+38  ;;  %v442_v19 = vsel %vm396_vm5, %v369_v4, -3e+38  ;;  %v415_v20 = vsel %vm391_vm6, %v364_v6, 3e+38  ;;  %v422_v24 = vmin.f32 %v414_v3, %v418_v11 }
  0xa1   : > { %v344_v7 = vmax.f32 %v336_v1, 0.0  ;;  %v346_v8 = vmax.f32 %v338_v2, 0.0  ;;  %v437_v21 = vsel %vm391_vm6, %v364_v6, -3e+38  ;;  %v444_v25 = vmax.f32 %v436_v5, %v440_v12 }
  0xa2   : > { %v417_v26 = vsel %vm393_vm7, %v366_v13, 3e+38  ;;  %v439_v27 = vsel %vm393_vm7, %v366_v13, -3e+38  ;;  %v424_v28 = vmin.f32 %v416_v9, %v420_v18  ;;  %v446_v36 = vmax.f32 %v438_v17, %v442_v19 }
  0xa3   : > { %v352_v14 = vpack.c.bf16 %v344_v7, %v344_v7  ;;  %v595_v10 = vpack.c.bf16 %v344_v7, %v692_v32  ;;  %v354_v15 = vpack.c.bf16 %v346_v8, %v346_v8  ;;  %v600_v16 = vpack.c.bf16 %v346_v8, %v695_v40 }
  0xa5   : > { %603 = vst [vmem:[%s702_s9 + $0x10] sm:$0xff] %v595_v10   ;;  %v368_v22 = vunpack.c.l.bf16 %v352_v14  ;;  %v370_v23 = vunpack.c.l.bf16 %v354_v15 }
  0xa6   : > { %604 = vst [vmem:[%s702_s9 + $0x18] sm:$0xff] %v600_v16  }
  0xa7   : > { %v419_v29 = vsel %vm395_vm8, %v368_v22, 3e+38  ;;  %v441_v30 = vsel %vm395_vm8, %v368_v22, -3e+38  ;;  %v421_v31 = vsel %vm397_vm9, %v370_v23, 3e+38 }
  0xa8   : > { %v423_v32 = vmin.f32 %v415_v20, %v419_v29  ;;  %v445_v33 = vmax.f32 %v437_v21, %v441_v30  ;;  %v425_v34 = vmin.f32 %v417_v26, %v421_v31  ;;  %v443_v35 = vsel %vm397_vm9, %v370_v23, -3e+38 }
  0xa9   : > { %v447_v37 = vmax.f32 %v439_v27, %v443_v35 }
  0xaa   : > { %v426_v38 = vmin.f32 %v422_v24, %v423_v32  ;;  %v448_v39 = vmax.f32 %v444_v25, %v445_v33  ;;  %v427_v40 = vmin.f32 %v424_v28, %v425_v34 }
  0xab   : > { %v449_v41 = vmax.f32 %v446_v36, %v447_v37 }
  0xac   : > { %v428_v42 = vmin.f32 %v426_v38, %v427_v40 }
  0xad   : > { %v450_v43 = vmax.f32 %v448_v39, %v449_v41 }
  0xae   : > { %v429_v44 = vrot.slane %v428_v42, 4 }
  0xaf   : > { %v451_v45 = vrot.slane %v450_v43, 4 }
  0xb0   : > { %v430_v46 = vmin.f32 %v428_v42, %v429_v44 }
  0xb1   : > { %v452_v47 = vmax.f32 %v450_v43, %v451_v45 }
  0xb2   : > { %v431_v48 = vrot.slane %v430_v46, 2 }
  0xb3   : > { %v453_v49 = vrot.slane %v452_v47, 2 }
  0xb4   : > { %v432_v50 = vmin.f32 %v430_v46, %v431_v48 }
  0xb5   : > { %v454_v51 = vmax.f32 %v452_v47, %v453_v49 }
  0xb6   : > { %v433_v52 = vrot.slane %v432_v50, 1 }
  0xb7   : > { %v455_v53 = vrot.slane %v454_v51, 1 }
  0xb8   : > { %v434_v54 = vmin.f32 %v432_v50, %v433_v52 }
  0xb9   : > { %v456_v55 = vmax.f32 %v454_v51, %v455_v53 }
  0xba   : > { %435 = vst [vmem:[%s238_s13] sm:$0x1] %v434_v54 }
  0xbb   : > { %457 = vst [vmem:[%s238_s13 + $0x1] sm:$0x1] %v456_v55 }
  0xbc PF: > { %s16_s18 = sadd.s32 1, %s624_s18  }
  0xbd   : > { %p13_p5 = scmp.ge.s32.totalorder %s16_s18, 4  }
  0xbf   :  { %15 = sbr.rel (!%p13_p5) target bundleno = 1 (0x1), region = 78 }

// kernel: _lambda_.8
= control target key start
LH: loop header
LB: loop body
LE: loop exit
PB: predicated region body
PF: predicated region fallthrough
CT: control target
= control target key end

     0   :  { %10 = vsyncpa [#allocation3], 0  ;;  %s910_s15 = smov 0   ;;  %s1070_s0 = inlined_call_operand.vmem [shape: bf16[128,128], index: 0, kind: input, shape index: {}]   ;;  %s1071_s1 = inlined_call_operand.vmem [shape: f32[2], index: 1, kind: input, shape index: {}]   ;;  %s1072_s2 = inlined_call_operand.vmem [shape: bf16[128,128], index: 2, kind: input, shape index: {}]   ;;  %s1073_s3 = inlined_call_operand.vmem [shape: s8[128,128], index: 3, kind: output, shape index: {0}]   ;;  %s1074_s4 = inlined_call_operand.vmem [shape: f32[2,2,128], index: 4, kind: output, shape index: {1}]  }
   0x1 LB: > { %s916_s16 = sadd.s32 4294967295, %s881_s15   ;;  %p603_p0 = scmp.ge.s32.totalorder %s881_s15, 1  ;;  %s881_s15 = sphi %s910_s15, %s16_s15  }
   0x2   : > { %p141_p1 = scmp.lt.s32.totalorder %s881_s15, 3  ;;  %s153_s19 = sshll.u32 %s1071_s1, 4  ;;  %s154_s19 = int_to_ptr.vmem [resolvable:$true] %s153_s19 }
   0x3   : > { %p844_p3 = scmp.eq.s32.totalorder %s916_s16, 0  ;;  %s883_s20 = smov [#allocation2]  }
   0x4   : > { %p142_p2 = pnand %p603_p0, %p141_p1 }
   0x6   : > { %p840_p4 = pneg %p142_p2  ;;  %178 = sbr.rel (%p142_p2) target bundleno = 222 (0xde), region = 32 }
   0x8   : > { %p841_p5 = pnand %p844_p3, %p840_p4 }
   0xa   : > { %843 = dma.vmem_to_smem (!%p841_p5), %s154_s19, 16, %s883_s20, [#allocation3]  }
   0xb   : > { %876 = dma.done.wait (%p844_p3), [#allocation3], 16  }
   0xc   : > { %878 = vsyncadd (%p844_p3), [#allocation3], 4294967280 }
   0xd   : > { %185 = sfence }
   0xe   : > { %v704_v0 = vld [vmem:[%s1072_s2 + $0x38] sm:$0xff]  ;;  %s608_s23 = sshll.u32 %s916_s16, 3  ;;  %s242_s24 = sld [smem:[#allocation2]]  ;;  %v703_v1 = vld [vmem:[%s1072_s2 + $0x30] sm:$0xff]  ;;  %v702_v2 = vld [vmem:[%s1072_s2 + $0x28] sm:$0xff] }
   0xf   : > { %p211_p6 = scmp.lt.s32.totalorder %s608_s23, 15  ;;  %s613_s25 = sld [smem:[#allocation2 + $0x1]]  ;;  %386 = vmatpush.bf16.msra.mxu0 %v704_v0  ;;  %724 = vmatpush.bf16.msra.mxu1 %v704_v0  ;;  %v701_v16 = vld [vmem:[%s1072_s2 + $0x20] sm:$0xff]  ;;  %v700_v31 = vld [vmem:[%s1072_s2 + $0x18] sm:$0xff]  ;;  %v699_v44 = vld [vmem:[%s1072_s2 + $0x10] sm:$0xff] }
  0x10   : > { %725 = vmatpush.bf16.msra.mxu2 %v704_v0  ;;  %726 = vmatpush.bf16.msra.mxu3 %v704_v0  ;;  %s610_s12 = sshll.u32 %s916_s16, 1  ;;  %s686_s26 = sshll.u32 %s916_s16, 6 }
  0x11   : > { %s1087_s23 = smov (!%p211_p6, %s608_s23), 15  ;;  %p986_p7 = scmp.lt.s32.totalorder %s610_s12, 3 }
  0x12   : > { %s609_s28 = sshll.u32 %s1087_s23, 2  ;;  %p222_p8 = scmp.lt.s32.totalorder %s916_s16, 1 }
  0x13   : > { %387 = vmatpush.bf16.msra.mxu0 %v703_v1  ;;  %727 = vmatpush.bf16.msra.mxu1 %v703_v1  ;;  %s214_s7 = scalar_lea.vmem %s1070_s0, %s609_s28  ;;  %s1089_s12 = smov (!%p986_p7, %s610_s12), 3 }
  0x14   : > { %728 = vmatpush.bf16.msra.mxu2 %v703_v1  ;;  %729 = vmatpush.bf16.msra.mxu3 %v703_v1  ;;  %v706_v3 = vld [vmem:[%s214_s7] sm:$0xff]   ;;  %v243_v4 = vstv %s242_s24  ;;  %v721_v5 = vld [vmem:[%s214_s7 + $0x8] sm:$0xff]   ;;  %v722_v6 = vld [vmem:[%s214_s7 + $0x10] sm:$0xff]   ;;  %s611_s22 = sshll.u32 %s1089_s12, 3  ;;  %s1091_s16 = smov (!%p222_p8, %s916_s16), 1 }
  0x15   : > { %v707_v7 = vunpack.c.l.bf16 %v706_v3  ;;  %v708_v8 = vunpack.c.h.bf16 %v706_v3  ;;  %v711_v9 = vunpack.c.l.bf16 %v721_v5  ;;  %v712_v10 = vunpack.c.h.bf16 %v721_v5  ;;  %v723_v11 = vld [vmem:[%s214_s7 + $0x18] sm:$0xff]   ;;  %v698_v1 = vld [vmem:[%s1072_s2 + $0x8] sm:$0xff]  ;;  %s612_s27 = sshll.u32 %s1091_s16, 1 }
  0x16   : > { %v937_v12 = vstv %s613_s25  ;;  %v715_v13 = vunpack.c.l.bf16 %v722_v6  ;;  %v716_v14 = vunpack.c.h.bf16 %v722_v6  ;;  %v719_v15 = vunpack.c.l.bf16 %v723_v11  ;;  %s1046_s25 = scalar_lea.vmem %s1073_s3, %s611_s22  ;;  %s225_s30 = scalar_lea.vmem %s1074_s4, %s612_s27 }
  0x17   : > { %388 = vmatpush.bf16.msra.mxu0 %v702_v2  ;;  %730 = vmatpush.bf16.msra.mxu1 %v702_v2  ;;  %v244_v17 = vmul.f32 %v707_v7, %v243_v4  ;;  %v245_v18 = vmul.f32 %v708_v8, %v243_v4  ;;  %v246_v19 = vmul.f32 %v711_v9, %v243_v4  ;;  %v720_v20 = vunpack.c.h.bf16 %v723_v11 }
  0x18   : > { %731 = vmatpush.bf16.msra.mxu2 %v702_v2  ;;  %732 = vmatpush.bf16.msra.mxu3 %v702_v2  ;;  %v247_v21 = vmul.f32 %v712_v10, %v243_v4  ;;  %v248_v22 = vmul.f32 %v715_v13, %v243_v4  ;;  %v249_v23 = vmul.f32 %v716_v14, %v243_v4 }
  0x19   : > { %v943_v24 = vadd.f32 %v937_v12, %v244_v17  ;;  %v946_v25 = vadd.f32 %v937_v12, %v245_v18  ;;  %v949_v26 = vadd.f32 %v937_v12, %v246_v19  ;;  %v960_v30 = vmul.f32 %v719_v15, %v243_v4  ;;  %v697_v19 = vld [vmem:[%s1072_s2] sm:$0xff] }
  0x1a   : > { %v952_v27 = vadd.f32 %v937_v12, %v247_v21  ;;  %v955_v28 = vadd.f32 %v937_v12, %v248_v22  ;;  %v958_v29 = vadd.f32 %v937_v12, %v249_v23  ;;  %v969_v35 = vmul.f32 %v720_v20, %v243_v4 }
  0x1b   : > { %389 = vmatpush.bf16.msra.mxu0 %v701_v16  ;;  %733 = vmatpush.bf16.msra.mxu1 %v701_v16  ;;  %v748_v32 = vand.u32 2147483647, %v943_v24  ;;  %v750_v33 = vcvt.f32.s32 %v943_v24  ;;  %v756_v34 = vand.u32 2147483647, %v946_v25  ;;  %v753_v36 = vand.u32 2147483648, %v943_v24 }
  0x1c   : > { %734 = vmatpush.bf16.msra.mxu2 %v701_v16  ;;  %735 = vmatpush.bf16.msra.mxu3 %v701_v16  ;;  %v758_v37 = vcvt.f32.s32 %v946_v25  ;;  %v630_v38 = vmax.f32 %v943_v24, -128.0  ;;  %v633_v39 = vmax.f32 %v946_v25, -128.0  ;;  %v761_v42 = vand.u32 2147483648, %v946_v25 }
  0x1d   : > { %vm975_vm0 = vcmp.lt.f32.partialorder %v748_v32, 8388608.0  ;;  %v751_v41 = vcvt.s32.f32 %v750_v33  ;;  %v764_v43 = vand.u32 2147483647, %v949_v26  ;;  %v766_v48 = vcvt.f32.s32 %v949_v26 }
  0x1e   : > { %v759_v45 = vcvt.s32.f32 %v758_v37  ;;  %v631_v46 = vmin.f32 %v630_v38, 127.0  ;;  %v634_v47 = vmin.f32 %v633_v39, 127.0  ;;  %vm991_vm1 = vcmp.lt.f32.partialorder %v756_v34, 8388608.0 }
  0x1f   : > { %390 = vmatpush.bf16.msra.mxu0 %v700_v31  ;;  %736 = vmatpush.bf16.msra.mxu1 %v700_v31  ;;  %v752_v49 = vand.u32 2147483647, %v751_v41  ;;  %vm995_vm2 = vcmp.lt.f32.partialorder %v764_v43, 8388608.0  ;;  %v772_v52 = vand.u32 2147483647, %v952_v27  ;;  %v767_v55 = vcvt.s32.f32 %v766_v48 }
  0x20   : > { %737 = vmatpush.bf16.msra.mxu2 %v700_v31  ;;  %738 = vmatpush.bf16.msra.mxu3 %v700_v31  ;;  %v760_v53 = vand.u32 2147483647, %v759_v45  ;;  %v814_v54 = vcvt.f32.s32 %v631_v46  ;;  %v769_v56 = vand.u32 2147483648, %v949_v26  ;;  %v817_v58 = vcvt.f32.s32 %v634_v47 }
  0x21   : > { %v754_v57 = vor.u32 %v753_v36, %v752_v49  ;;  %vm1001_vm3 = vcmp.lt.f32.partialorder %v772_v52, 8388608.0  ;;  %v774_v60 = vcvt.f32.s32 %v952_v27  ;;  %v768_v62 = vand.u32 2147483647, %v767_v55 }
  0x22   : > { %v762_v61 = vor.u32 %v761_v42, %v760_v53  ;;  %v777_v63 = vand.u32 2147483648, %v952_v27  ;;  %v636_v0 = vmax.f32 %v949_v26, -128.0  ;;  %v639_v4 = vmax.f32 %v952_v27, -128.0 }
  0x23   : > { %391 = vmatpush.bf16.msra.mxu0 %v699_v44  ;;  %739 = vmatpush.bf16.msra.mxu1 %v699_v44  ;;  %v755_v2 = vsel %vm975_vm0, %v754_v57, %v943_v24  ;;  %v775_v3 = vcvt.s32.f32 %v774_v60  ;;  %v780_v5 = vand.u32 2147483647, %v955_v28  ;;  %v770_v8 = vor.u32 %v769_v56, %v768_v62 }
  0x24   : > { %740 = vmatpush.bf16.msra.mxu2 %v699_v44  ;;  %741 = vmatpush.bf16.msra.mxu3 %v699_v44  ;;  %v763_v6 = vsel %vm991_vm1, %v762_v61, %v946_v25  ;;  %v270_v7 = vmax.f32 %v755_v2, -128.0  ;;  %v637_v9 = vmin.f32 %v636_v0, 127.0  ;;  %v310_v11 = vpack.c.b16 %v817_v58, %v814_v54 }
  0x25   : > { %v271_v10 = vmax.f32 %v763_v6, -128.0  ;;  %v776_v13 = vand.u32 2147483647, %v775_v3  ;;  %v640_v14 = vmin.f32 %v639_v4, 127.0  ;;  %v771_v16 = vsel %vm995_vm2, %v770_v8, %v949_v26 }
  0x26   : > { %v278_v15 = vmin.f32 %v270_v7, 127.0  ;;  %v820_v17 = vcvt.f32.s32 %v637_v9  ;;  %v782_v18 = vcvt.f32.s32 %v955_v28  ;;  %v272_v22 = vmax.f32 %v771_v16, -128.0 }
  0x27   : > { %392 = vmatpush.bf16.msra.mxu0 %v698_v1  ;;  %742 = vmatpush.bf16.msra.mxu1 %v698_v1  ;;  %v279_v20 = vmin.f32 %v271_v10, 127.0  ;;  %v778_v21 = vor.u32 %v777_v63, %v776_v13  ;;  %v823_v23 = vcvt.f32.s32 %v640_v14  ;;  %vm1033_vm4 = vcmp.lt.f32.partialorder %v780_v5, 8388608.0 }
  0x28   : > { %743 = vmatpush.bf16.msra.mxu2 %v698_v1  ;;  %744 = vmatpush.bf16.msra.mxu3 %v698_v1  ;;  %v783_v25 = vcvt.s32.f32 %v782_v18  ;;  %v785_v26 = vand.u32 2147483648, %v955_v28  ;;  %v790_v31 = vcvt.f32.s32 %v958_v29  ;;  %v788_v36 = vand.u32 2147483647, %v958_v29 }
  0x29   : > { %v318_v32 = vpack.c.bf16 %v279_v20, %v278_v15  ;;  %v779_v33 = vsel %vm1001_vm3, %v778_v21, %v952_v27  ;;  %v311_v34 = vpack.c.b16 %v823_v23, %v820_v17  ;;  %v280_v38 = vmin.f32 %v272_v22, 127.0 }
  0x2a   : > { %v273_v37 = vmax.f32 %v779_v33, -128.0  ;;  %v784_v39 = vand.u32 2147483647, %v783_v25  ;;  %v791_v40 = vcvt.s32.f32 %v790_v31  ;;  %v793_v42 = vand.u32 2147483648, %v958_v29 }
  0x2b   : > { %393 = vmatpush.bf16.msra.mxu0 %v697_v19  ;;  %745 = vmatpush.bf16.msra.mxu1 %v697_v19  ;;  %v312_v41 = vpack.c.b8 %v311_v34, %v310_v11  ;;  %v642_v27 = vmax.f32 %v955_v28, -128.0  ;;  %v645_v43 = vmax.f32 %v958_v29, -128.0  ;;  %v260_v47 = vadd.f32 %v937_v12, %v960_v30 }
  0x2c   : > { %746 = vmatpush.bf16.msra.mxu2 %v697_v19  ;;  %747 = vmatpush.bf16.msra.mxu3 %v697_v19  ;;  %v281_v44 = vmin.f32 %v273_v37, 127.0  ;;  %v786_v45 = vor.u32 %v785_v26, %v784_v39  ;;  %v792_v46 = vand.u32 2147483647, %v791_v40  ;;  %vm789_vm5 = vcmp.lt.f32.partialorder %v788_v36, 8388608.0 }
  0x2d   : > { %316 = vst [vmem:[%s1046_s25] sm:$0xff] %v312_v41  ;;  %v643_v48 = vmin.f32 %v642_v27, 127.0  ;;  %v646_v49 = vmin.f32 %v645_v43, 127.0  ;;  %v261_v53 = vadd.f32 %v937_v12, %v969_v35  ;;  %v798_v55 = vcvt.f32.s32 %v260_v47 }
  0x2e   : > { %394 = vmatmul.bf16.vlgmr.msra.gmra.mxu0 %v318_v32  ;;  %v319_v50 = vpack.c.bf16 %v281_v44, %v280_v38  ;;  %v787_v51 = vsel %vm1033_vm4, %v786_v45, %v955_v28  ;;  %v794_v52 = vor.u32 %v793_v42, %v792_v46  ;;  %v796_v30 = vand.u32 2147483647, %v260_v47 }
  0x2f   : > { %v274_v54 = vmax.f32 %v787_v51, -128.0  ;;  %v799_v59 = vcvt.s32.f32 %v798_v55  ;;  %v801_v60 = vand.u32 2147483648, %v260_v47  ;;  %v826_v61 = vcvt.f32.s32 %v643_v48 }
  0x30   : > { %399 = vmatmul.bf16.vlgmr.msra.gmra.mxu1 %v319_v50  ;;  %v795_v56 = vsel %vm789_vm5, %v794_v52, %v958_v29  ;;  %v829_v62 = vcvt.f32.s32 %v646_v49  ;;  %v806_v63 = vcvt.f32.s32 %v261_v53  ;;  %v648_v0 = vmax.f32 %v260_v47, -128.0 }
  0x31   : > { %v275_v57 = vmax.f32 %v795_v56, -128.0  ;;  %v282_v58 = vmin.f32 %v274_v54, 127.0  ;;  %v800_v28 = vand.u32 2147483647, %v799_v59  ;;  %v804_v2 = vand.u32 2147483647, %v261_v53 }
  0x32   : > { %v651_v3 = vmax.f32 %v261_v53, -128.0  ;;  %vm797_vm6 = vcmp.lt.f32.partialorder %v796_v30, 8388608.0  ;;  %v807_v12 = vcvt.s32.f32 %v806_v63  ;;  %v809_v35 = vand.u32 2147483648, %v261_v53 }
  0x33   : > { %v283_v1 = vmin.f32 %v275_v57, 127.0  ;;  %v649_v4 = vmin.f32 %v648_v0, 127.0  ;;  %v802_v6 = vor.u32 %v801_v60, %v800_v28  ;;  %v313_v9 = vpack.c.b16 %v829_v62, %v826_v61 }
  0x34   : > { %v652_v29 = vmin.f32 %v651_v3, 127.0  ;;  %v808_v7 = vand.u32 2147483647, %v807_v12  ;;  %vm805_vm7 = vcmp.lt.f32.partialorder %v804_v2, 8388608.0  ;;  %v415_v22 = vlaneseq }
  0x35   : > { %v320_v5 = vpack.c.bf16 %v283_v1, %v282_v58  ;;  %v832_v8 = vcvt.f32.s32 %v649_v4  ;;  %v803_v10 = vsel %vm797_vm6, %v802_v6, %v260_v47  ;;  %v425_v24 = vstv %s686_s26 }
  0x36   : > { %v835_v11 = vcvt.f32.s32 %v652_v29  ;;  %v810_v13 = vor.u32 %v809_v35, %v808_v7  ;;  %v276_v14 = vmax.f32 %v803_v10, -128.0  ;;  %v416_v23 = vshrl.u32 %v415_v22, 7 }
  0x37   : > { %404 = vmatmul.bf16.vlgmr.msra.gmra.mxu2 %v320_v5  ;;  %v884_v38 = vmov 0.0  }
  0x38   : > { %v314_v15 = vpack.c.b16 %v835_v11, %v832_v8  ;;  %v811_v16 = vsel %vm805_vm7, %v810_v13, %v261_v53  ;;  %v284_v18 = vmin.f32 %v276_v14, 127.0  ;;  %v417_v25 = vadd.s32 8, %v416_v23 }
  0x39   : > { %v277_v17 = vmax.f32 %v811_v16, -128.0  ;;  %v426_v26 = vadd.s32 %v425_v24, %v416_v23  ;;  %v418_v31 = vadd.s32 16, %v416_v23  ;;  %v419_v36 = vadd.s32 24, %v416_v23 }
  0x3a   : > { %v315_v19 = vpack.c.b8 %v314_v15, %v313_v9  ;;  %v427_v32 = vadd.s32 %v425_v24, %v417_v25  ;;  %v420_v40 = vadd.s32 32, %v416_v23  ;;  %v421_v47 = vadd.s32 40, %v416_v23 }
  0x3b   : > { %v285_v20 = vmin.f32 %v277_v17, 127.0  ;;  %vm434_vm8 = vcmp.lt.s32.totalorder %v426_v26, 128  ;;  %v428_v34 = vadd.s32 %v425_v24, %v418_v31  ;;  %v429_v42 = vadd.s32 %v425_v24, %v419_v36 }
  0x3c   : > { %317 = vst [vmem:[%s1046_s25 + $0x8] sm:$0xff] %v315_v19  ;;  %vm435_vm9 = vcmp.lt.s32.totalorder %v427_v32, 128  ;;  %v687_v39 = vsel %vm434_vm8, 1.0, %v884_v38  ;;  %v430_v46 = vadd.s32 %v425_v24, %v420_v40  ;;  %v422_v54 = vadd.s32 48, %v416_v23 }
  0x3d   : > { %v321_v21 = vpack.c.bf16 %v285_v20, %v284_v18  ;;  %vm436_vm10 = vcmp.lt.s32.totalorder %v428_v34, 128  ;;  %v688_v41 = vsel %vm435_vm9, 1.0, %v884_v38  ;;  %vm437_vm11 = vcmp.lt.s32.totalorder %v429_v42, 128 }
  0x3e   : > { %v689_v44 = vsel %vm436_vm10, 1.0, %v884_v38  ;;  %v690_v53 = vsel %vm437_vm11, 1.0, %v884_v38  ;;  %vm438_vm12 = vcmp.lt.s32.totalorder %v430_v46, 128  ;;  %v431_v56 = vadd.s32 %v425_v24, %v421_v47 }
  0x3f   : > { %409 = vmatmul.bf16.vlgmr.msra.gmra.mxu3 %v321_v21  ;;  %v691_v60 = vsel %vm438_vm12, 1.0, %v884_v38  ;;  %v432_v61 = vadd.s32 %v425_v24, %v422_v54  ;;  %v423_v28 = vadd.s32 56, %v416_v23 }
  0x40   : > { %vm439_vm13 = vcmp.lt.s32.totalorder %v431_v56, 128 }
  0x41   : > { %v692_v2 = vsel %vm439_vm13, 1.0, %v884_v38  ;;  %vm440_vm14 = vcmp.lt.s32.totalorder %v432_v61, 128  ;;  %v433_v6 = vadd.s32 %v425_v24, %v423_v28 }
  0x42   : > { %v693_v7 = vsel %vm440_vm14, 1.0, %v884_v38 }
  0x43   : > { %vm441_vm15 = vcmp.lt.s32.totalorder %v433_v6, 128 }
  0x44   : > { %v694_v14 = vsel %vm441_vm15, 1.0, %v884_v38 }
  0xab   : > { %v395_v33 = vpop.f32.mrf.mxu0 }
  0xac   : > { %v458_v27 = vmul.f32 %v687_v39, %v395_v33 }
  0xad   : > { %v400_v37 = vpop.f32.mrf.mxu1 }
  0xae   : > { %v480_v49 = vmul.f32 %v458_v27, %v395_v33  ;;  %v460_v50 = vmul.f32 %v689_v44, %v400_v37 }
  0xb0   : > { %v482_v57 = vmul.f32 %v460_v50, %v400_v37 }
  0xb3   : > { %v397_v43 = vpop.f32.mrf.mxu0 }
  0xb4   : > { %v459_v45 = vmul.f32 %v688_v41, %v397_v43 }
  0xb5   : > { %v402_v52 = vpop.f32.mrf.mxu1 }
  0xb6   : > { %v481_v48 = vmul.f32 %v459_v45, %v397_v43  ;;  %v466_v51 = vadd.f32 %v459_v45, %v458_v27  ;;  %v461_v58 = vmul.f32 %v690_v53, %v402_v52 }
  0xb8   : > { %v488_v55 = vadd.f32 %v481_v48, %v480_v49  ;;  %v467_v59 = vadd.f32 %v466_v51, %v460_v50  ;;  %v483_v1 = vmul.f32 %v461_v58, %v402_v52 }
  0xba   : > { %v405_v30 = vpop.f32.mrf.mxu2  ;;  %v489_v62 = vadd.f32 %v488_v55, %v482_v57  ;;  %v468_v0 = vadd.f32 %v467_v59, %v461_v58 }
  0xbb   : > { %v462_v63 = vmul.f32 %v691_v60, %v405_v30 }
  0xbc   : > { %v490_v3 = vadd.f32 %v489_v62, %v483_v1 }
  0xbd   : > { %v484_v35 = vmul.f32 %v462_v63, %v405_v30  ;;  %v469_v5 = vadd.f32 %v468_v0, %v462_v63 }
  0xbf   : > { %v491_v8 = vadd.f32 %v490_v3, %v484_v35 }
  0xc2   : > { %v407_v12 = vpop.f32.mrf.mxu2  ;;  %v410_v29 = vpop.f32.mrf.mxu3 }
  0xc3   : > { %v463_v4 = vmul.f32 %v692_v2, %v407_v12  ;;  %v464_v9 = vmul.f32 %v693_v7, %v410_v29 }
  0xc5   : > { %v470_v10 = vadd.f32 %v469_v5, %v463_v4  ;;  %v485_v11 = vmul.f32 %v463_v4, %v407_v12  ;;  %v486_v15 = vmul.f32 %v464_v9, %v410_v29 }
  0xc7   : > { %v492_v13 = vadd.f32 %v491_v8, %v485_v11  ;;  %v471_v16 = vadd.f32 %v470_v10, %v464_v9 }
  0xc9   : > { %v493_v19 = vadd.f32 %v492_v13, %v486_v15 }
  0xca   : > { %v412_v17 = vpop.f32.mrf.mxu3 }
  0xcb   : > { %v465_v18 = vmul.f32 %v694_v14, %v412_v17 }
  0xcd   : > { %v472_v20 = vadd.f32 %v471_v16, %v465_v18  ;;  %v487_v21 = vmul.f32 %v465_v18, %v412_v17 }
  0xcf   : > { %v473_v22 = vrot.slane %v472_v20, 4  ;;  %v494_v23 = vadd.f32 %v493_v19, %v487_v21 }
  0xd1   : > { %v474_v24 = vadd.f32 %v473_v22, %v472_v20  ;;  %v495_v25 = vrot.slane %v494_v23, 4 }
  0xd3   : > { %v475_v26 = vrot.slane %v474_v24, 2  ;;  %v496_v31 = vadd.f32 %v495_v25, %v494_v23 }
  0xd5   : > { %v476_v32 = vadd.f32 %v475_v26, %v474_v24  ;;  %v497_v33 = vrot.slane %v496_v31, 2 }
  0xd7   : > { %v477_v34 = vrot.slane %v476_v32, 1  ;;  %v498_v36 = vadd.f32 %v497_v33, %v496_v31 }
  0xd9   : > { %v478_v37 = vadd.f32 %v477_v34, %v476_v32  ;;  %v499_v38 = vrot.slane %v498_v36, 1 }
  0xdb   : > { %479 = vst [vmem:[%s225_s30] sm:$0x1] %v478_v37  ;;  %v500_v39 = vadd.f32 %v499_v38, %v498_v36 }
  0xdd   : > { %501 = vst [vmem:[%s225_s30 + $0x1] sm:$0x1] %v500_v39 }
  0xde PF: > { %s16_s15 = sadd.s32 1, %s881_s15  }
  0xdf   : > { %p13_p9 = scmp.ge.s32.totalorder %s16_s15, 4  }
  0xe1   :  { %15 = sbr.rel (!%p13_p9) target bundleno = 1 (0x1), region = 79 }
  0xe6   :  { %538 = vsyncpa [#allocation3], 1 }
  0xe7   :  { %540 = vsyncpa [#allocation3 + $0x1], 1 }

// kernel: _lambda_.6
= control target key start
LH: loop header
LB: loop body
LE: loop exit
PB: predicated region body
PF: predicated region fallthrough
CT: control target
= control target key end

     0   :  { %10 = vsyncpa [#allocation3], 0  ;;  %s718_s15 = smov 0   ;;  %s835_s0 = inlined_call_operand.vmem [shape: f32[128,8], index: 0, kind: input, shape index: {}]   ;;  %s836_s1 = inlined_call_operand.vmem [shape: f32[2], index: 1, kind: input, shape index: {}]   ;;  %s837_s2 = inlined_call_operand.vmem [shape: bf16[8,128], index: 2, kind: input, shape index: {}]   ;;  %s838_s3 = inlined_call_operand.vmem [shape: bf16[128,8], index: 3, kind: output, shape index: {0}]   ;;  %s839_s4 = inlined_call_operand.vmem [shape: f32[2,2,128], index: 4, kind: output, shape index: {1}]  }
   0x1 LB: > { %s724_s16 = sadd.s32 4294967295, %s689_s15   ;;  %p551_p0 = scmp.ge.s32.totalorder %s689_s15, 1  ;;  %s689_s15 = sphi %s718_s15, %s16_s15  }
   0x2   : > { %p141_p1 = scmp.lt.s32.totalorder %s689_s15, 3  ;;  %s153_s19 = sshll.u32 %s836_s1, 4  ;;  %s154_s19 = int_to_ptr.vmem [resolvable:$true] %s153_s19 }
   0x3   : > { %p652_p3 = scmp.eq.s32.totalorder %s724_s16, 0  ;;  %s691_s20 = smov [#allocation2]  }
   0x4   : > { %p142_p2 = pnand %p551_p0, %p141_p1 }
   0x6   : > { %p648_p4 = pneg %p142_p2  ;;  %178 = sbr.rel (%p142_p2) target bundleno = 221 (0xdd), region = 32 }
   0x8   : > { %p649_p5 = pnand %p652_p3, %p648_p4 }
   0xa   : > { %651 = dma.vmem_to_smem (!%p649_p5), %s154_s19, 16, %s691_s20, [#allocation3]  }
   0xb   : > { %684 = dma.done.wait (%p652_p3), [#allocation3], 16  }
   0xc   : > { %686 = vsyncadd (%p652_p3), [#allocation3], 4294967280 }
   0xd   : > { %185 = sfence }
   0xe   : > { %v296_v0 = vld [vmem:[%s837_s2] sm:$0xf]  ;;  %vm330_vm0 = vcmask 1043456   ;;  %s556_s23 = sshll.u32 %s724_s16, 3  ;;  %s235_s24 = sld [smem:[#allocation2]]  ;;  %vm287_vm3 = vcmask 60416  }
   0xf   : > { %v332_v1 = vsel %vm330_vm0, %v296_v0, 0  ;;  %p211_p6 = scmp.lt.s32.totalorder %s556_s23, 15  ;;  %s561_s25 = sld [smem:[#allocation2 + $0x1]]  ;;  %vm317_vm7 = vcmask 64512  }
  0x10   : > { %341 = vmatpush.bf16.msra.mxu0 %v332_v1  ;;  %577 = vmatpush.bf16.msra.mxu1 %v332_v1  ;;  %s566_s8 = sshll.u32 %s724_s16, 6  ;;  %p222_p7 = scmp.lt.s32.totalorder %s724_s16, 1 }
  0x11   : > { %578 = vmatpush.bf16.msra.mxu2 %v332_v1  ;;  %579 = vmatpush.bf16.msra.mxu3 %v332_v1  ;;  %s853_s23 = smov (!%p211_p6, %s556_s23), 15 }
  0x12   : > { %s557_s26 = sshll.u32 %s853_s23, 3  ;;  %s559_s30 = sshll.u32 %s853_s23, 2 }
  0x13   : > { %s214_s29 = scalar_lea.vmem %s835_s0, %s557_s26  ;;  %s791_s7 = scalar_lea.vmem %s838_s3, %s559_s30 }
  0x14   : > { %v236_v2 = vstv %s235_s24  ;;  %v227_v3 = vld [vmem:[%s214_s29] sm:$0xff]  ;;  %v228_v4 = vld [vmem:[%s214_s29 + $0x8] sm:$0xff]  ;;  %v229_v6 = vld [vmem:[%s214_s29 + $0x10] sm:$0xff]  ;;  %s855_s16 = smov (!%p222_p7, %s724_s16), 1 }
  0x15   : > { %v742_v5 = vstv %s561_s25  ;;  %v237_v7 = vmul.f32 %v236_v2, %v227_v3  ;;  %v238_v8 = vmul.f32 %v236_v2, %v228_v4  ;;  %v230_v9 = vld [vmem:[%s214_s29 + $0x18] sm:$0xff]  ;;  %v239_v10 = vmul.f32 %v236_v2, %v229_v6  ;;  %v231_v11 = vld [vmem:[%s214_s29 + $0x20] sm:$0xff]  ;;  %v232_v12 = vld [vmem:[%s214_s29 + $0x28] sm:$0xff]  ;;  %s560_s9 = sshll.u32 %s855_s16, 1 }
  0x16   : > { %v240_v13 = vmul.f32 %v236_v2, %v230_v9  ;;  %v241_v14 = vmul.f32 %v236_v2, %v231_v11  ;;  %v242_v15 = vmul.f32 %v236_v2, %v232_v12  ;;  %v233_v16 = vld [vmem:[%s214_s29 + $0x30] sm:$0xff]  ;;  %v234_v17 = vld [vmem:[%s214_s29 + $0x38] sm:$0xff]  ;;  %s225_s12 = scalar_lea.vmem %s839_s4, %s560_s9 }
  0x17   : > { %v247_v18 = vadd.f32 %v742_v5, %v237_v7  ;;  %v248_v19 = vadd.f32 %v742_v5, %v238_v8  ;;  %v249_v20 = vadd.f32 %v742_v5, %v239_v10  ;;  %v243_v24 = vmul.f32 %v236_v2, %v233_v16 }
  0x18   : > { %v250_v21 = vadd.f32 %v742_v5, %v240_v13  ;;  %v749_v22 = vadd.f32 %v742_v5, %v241_v14  ;;  %v752_v23 = vadd.f32 %v742_v5, %v242_v15  ;;  %v244_v28 = vmul.f32 %v236_v2, %v234_v17 }
  0x19   : > { %v580_v25 = vand.u32 2147483647, %v247_v18  ;;  %v582_v26 = vcvt.f32.s32 %v247_v18  ;;  %v588_v27 = vand.u32 2147483647, %v248_v19  ;;  %v585_v29 = vand.u32 2147483648, %v247_v18 }
  0x1a   : > { %v590_v30 = vcvt.f32.s32 %v248_v19  ;;  %v596_v31 = vand.u32 2147483647, %v249_v20  ;;  %v598_v32 = vcvt.f32.s32 %v249_v20  ;;  %v593_v36 = vand.u32 2147483648, %v248_v19 }
  0x1b   : > { %vm754_vm1 = vcmp.lt.f32.partialorder %v580_v25, 8388608.0  ;;  %v583_v34 = vcvt.s32.f32 %v582_v26  ;;  %vm758_vm2 = vcmp.lt.f32.partialorder %v588_v27, 8388608.0  ;;  %v601_v39 = vand.u32 2147483648, %v249_v20 }
  0x1c   : > { %v591_v37 = vcvt.s32.f32 %v590_v30  ;;  %v599_v38 = vcvt.s32.f32 %v598_v32  ;;  %v604_v40 = vand.u32 2147483647, %v250_v21  ;;  %vm762_vm4 = vcmp.lt.f32.partialorder %v596_v31, 8388608.0 }
  0x1d   : > { %v584_v41 = vand.u32 2147483647, %v583_v34  ;;  %v606_v43 = vcvt.f32.s32 %v250_v21  ;;  %v612_v44 = vand.u32 2147483647, %v749_v22  ;;  %v609_v47 = vand.u32 2147483648, %v250_v21 }
  0x1e   : > { %v592_v45 = vand.u32 2147483647, %v591_v37  ;;  %v600_v46 = vand.u32 2147483647, %v599_v38  ;;  %v614_v48 = vcvt.f32.s32 %v749_v22  ;;  %vm768_vm5 = vcmp.lt.f32.partialorder %v604_v40, 8388608.0 }
  0x1f   : > { %v586_v49 = vor.u32 %v585_v29, %v584_v41  ;;  %v607_v51 = vcvt.s32.f32 %v606_v43  ;;  %vm772_vm6 = vcmp.lt.f32.partialorder %v612_v44, 8388608.0  ;;  %v617_v56 = vand.u32 2147483648, %v749_v22 }
  0x20   : > { %v594_v53 = vor.u32 %v593_v36, %v592_v45  ;;  %v602_v54 = vor.u32 %v601_v39, %v600_v46  ;;  %v615_v55 = vcvt.s32.f32 %v614_v48  ;;  %v620_v59 = vand.u32 2147483647, %v752_v23 }
  0x21   : > { %v587_v57 = vsel %vm754_vm1, %v586_v49, %v247_v18  ;;  %v608_v58 = vand.u32 2147483647, %v607_v51  ;;  %v622_v60 = vcvt.f32.s32 %v752_v23  ;;  %v625_v4 = vand.u32 2147483648, %v752_v23 }
  0x22   : > { %v595_v61 = vsel %vm758_vm2, %v594_v53, %v248_v19  ;;  %v263_v62 = vmax.f32 %v587_v57, -128.0  ;;  %v603_v63 = vsel %vm762_vm4, %v602_v54, %v249_v20  ;;  %v616_v0 = vand.u32 2147483647, %v615_v55 }
  0x23   : > { %v264_v1 = vmax.f32 %v595_v61, -128.0  ;;  %v610_v2 = vor.u32 %v609_v47, %v608_v58  ;;  %v265_v3 = vmax.f32 %v603_v63, -128.0  ;;  %v623_v8 = vcvt.s32.f32 %v622_v60 }
  0x24   : > { %v271_v6 = vmin.f32 %v263_v62, 127.0  ;;  %v618_v7 = vor.u32 %v617_v56, %v616_v0  ;;  %v253_v9 = vadd.f32 %v742_v5, %v243_v24  ;;  %vm795_vm8 = vcmp.lt.f32.partialorder %v620_v59, 8388608.0 }
  0x25   : > { %v272_v10 = vmin.f32 %v264_v1, 127.0  ;;  %v611_v11 = vsel %vm768_vm5, %v610_v2, %v250_v21  ;;  %v273_v12 = vmin.f32 %v265_v3, 127.0  ;;  %v624_v17 = vand.u32 2147483647, %v623_v8 }
  0x26   : > { %v279_v14 = vpack.c.bf16 %v271_v6, %v271_v6  ;;  %v266_v15 = vmax.f32 %v611_v11, -128.0  ;;  %v619_v16 = vsel %vm772_vm6, %v618_v7, %v749_v22  ;;  %v254_v24 = vadd.f32 %v742_v5, %v244_v28 }
  0x27   : > { %v280_v18 = vpack.c.bf16 %v272_v10, %v272_v10  ;;  %v281_v19 = vpack.c.bf16 %v273_v12, %v273_v12  ;;  %v267_v20 = vmax.f32 %v619_v16, -128.0  ;;  %v626_v26 = vor.u32 %v625_v4, %v624_v17 }
  0x28   : > { %288 = vst.msk [vmem:[%s791_s7] sm:$0xf] %vm287_vm3, %v279_v14  ;;  %v305_v21 = vunpack.c.l.b16 %v279_v14  ;;  %v274_v25 = vmin.f32 %v266_v15, 127.0  ;;  %v630_v27 = vcvt.f32.s32 %v253_v9  ;;  %v628_v22 = vand.u32 2147483647, %v253_v9 }
  0x29   : > { %289 = vst.msk [vmem:[%s791_s7 + $0x4] sm:$0xf] %vm287_vm3, %v280_v18  ;;  %v306_v29 = vunpack.c.l.b16 %v280_v18  ;;  %v307_v30 = vunpack.c.l.b16 %v281_v19  ;;  %v275_v31 = vmin.f32 %v267_v20, 127.0  ;;  %v627_v5 = vsel %vm795_vm8, %v626_v26, %v752_v23 }
  0x2a   : > { %v282_v32 = vpack.c.bf16 %v274_v25, %v274_v25  ;;  %290 = vst.msk [vmem:[%s791_s7 + $0x8] sm:$0xf] %vm287_vm3, %v281_v19  ;;  %v631_v28 = vcvt.s32.f32 %v630_v27  ;;  %v633_v33 = vand.u32 2147483648, %v253_v9  ;;  %v268_v35 = vmax.f32 %v627_v5, -128.0 }
  0x2b   : > { %v313_v34 = vpack.c.b16 %v306_v29, %v305_v21  ;;  %v283_v36 = vpack.c.bf16 %v275_v31, %v275_v31  ;;  %v638_v39 = vcvt.f32.s32 %v254_v24  ;;  %vm629_vm9 = vcmp.lt.f32.partialorder %v628_v22, 8388608.0 }
  0x2c   : > { %291 = vst.msk [vmem:[%s791_s7 + $0xc] sm:$0xf] %vm287_vm3, %v282_v32  ;;  %v308_v37 = vunpack.c.l.b16 %v282_v32  ;;  %v632_v38 = vand.u32 2147483647, %v631_v28  ;;  %v276_v40 = vmin.f32 %v268_v35, 127.0  ;;  %v641_v44 = vand.u32 2147483648, %v254_v24 }
  0x2d   : > { %562 = vmatmul.msk.bf16.vlgmr.msra.gmra.mxu0 %vm317_vm7, %v313_v34  ;;  %292 = vst.msk [vmem:[%s791_s7 + $0x10] sm:$0xf] %vm287_vm3, %v283_v36  ;;  %v636_v41 = vand.u32 2147483647, %v254_v24  ;;  %v639_v43 = vcvt.s32.f32 %v638_v39  ;;  %v309_v46 = vunpack.c.l.b16 %v283_v36  ;;  %v363_v62 = vlaneseq }
  0x2e   : > { %v314_v42 = vpack.c.b16 %v308_v37, %v307_v30  ;;  %v634_v23 = vor.u32 %v633_v33, %v632_v38  ;;  %v284_v45 = vpack.c.bf16 %v276_v40, %v276_v40  ;;  %v373_v0 = vstv %s566_s8 }
  0x2f   : > { %v640_v48 = vand.u32 2147483647, %v639_v43  ;;  %vm637_vm10 = vcmp.lt.f32.partialorder %v636_v41, 8388608.0  ;;  %v364_v63 = vshrl.u32 %v363_v62, 7  ;;  %v692_v10 = vmov 0.0  }
  0x30   : > { %563 = vmatmul.msk.bf16.vlgmr.msra.gmra.mxu1 %vm317_vm7, %v314_v42  ;;  %v635_v47 = vsel %vm629_vm9, %v634_v23, %v253_v9  ;;  %293 = vst.msk [vmem:[%s791_s7 + $0x14] sm:$0xf] %vm287_vm3, %v284_v45  ;;  %v310_v49 = vunpack.c.l.b16 %v284_v45 }
  0x31   : > { %v269_v50 = vmax.f32 %v635_v47, -128.0  ;;  %v642_v51 = vor.u32 %v641_v44, %v640_v48  ;;  %v365_v1 = vadd.s32 8, %v364_v63  ;;  %v374_v2 = vadd.s32 %v373_v0, %v364_v63 }
  0x32   : > { %v315_v52 = vpack.c.b16 %v310_v49, %v309_v46  ;;  %v366_v3 = vadd.s32 16, %v364_v63  ;;  %v367_v8 = vadd.s32 24, %v364_v63  ;;  %v368_v12 = vadd.s32 32, %v364_v63 }
  0x33   : > { %v277_v53 = vmin.f32 %v269_v50, 127.0  ;;  %v643_v54 = vsel %vm637_vm10, %v642_v51, %v254_v24  ;;  %v375_v4 = vadd.s32 %v373_v0, %v365_v1  ;;  %vm382_vm11 = vcmp.lt.s32.totalorder %v374_v2, 128 }
  0x34   : > { %564 = vmatmul.msk.bf16.vlgmr.msra.gmra.mxu2 %vm317_vm7, %v315_v52  ;;  %v270_v55 = vmax.f32 %v643_v54, -128.0  ;;  %v376_v7 = vadd.s32 %v373_v0, %v366_v3  ;;  %v567_v11 = vsel %vm382_vm11, 1.0, %v692_v10  ;;  %v377_v13 = vadd.s32 %v373_v0, %v367_v8 }
  0x35   : > { %v285_v56 = vpack.c.bf16 %v277_v53, %v277_v53  ;;  %vm383_vm12 = vcmp.lt.s32.totalorder %v375_v4, 128  ;;  %v378_v18 = vadd.s32 %v373_v0, %v368_v12  ;;  %v369_v20 = vadd.s32 40, %v364_v63 }
  0x36   : > { %v278_v57 = vmin.f32 %v270_v55, 127.0  ;;  %vm384_vm13 = vcmp.lt.s32.totalorder %v376_v7, 128  ;;  %v568_v14 = vsel %vm383_vm12, 1.0, %v692_v10  ;;  %vm385_vm14 = vcmp.lt.s32.totalorder %v377_v13, 128 }
  0x37   : > { %294 = vst.msk [vmem:[%s791_s7 + $0x18] sm:$0xf] %vm287_vm3, %v285_v56  ;;  %v311_v59 = vunpack.c.l.b16 %v285_v56  ;;  %v569_v16 = vsel %vm384_vm13, 1.0, %v692_v10  ;;  %v570_v29 = vsel %vm385_vm14, 1.0, %v692_v10  ;;  %vm386_vm15 = vcmp.lt.s32.totalorder %v378_v18, 128 }
  0x38   : > { %v286_v58 = vpack.c.bf16 %v278_v57, %v278_v57  ;;  %v370_v30 = vadd.s32 48, %v364_v63  ;;  %v379_v22 = vadd.s32 %v373_v0, %v369_v20  ;;  %v571_v34 = vsel %vm386_vm15, 1.0, %v692_v10 }
  0x39   : > { %v371_v40 = vadd.s32 56, %v364_v63 }
  0x3a   : > { %295 = vst.msk [vmem:[%s791_s7 + $0x1c] sm:$0xf] %vm287_vm3, %v286_v58  ;;  %v312_v60 = vunpack.c.l.b16 %v286_v58  ;;  %v380_v35 = vadd.s32 %v373_v0, %v370_v30  ;;  %vm387_vm0 = vcmp.lt.s32.totalorder %v379_v22, 128 }
  0x3b   : > { %v572_v41 = vsel %vm387_vm0, 1.0, %v692_v10  ;;  %v381_v46 = vadd.s32 %v373_v0, %v371_v40 }
  0x3c   : > { %v316_v61 = vpack.c.b16 %v312_v60, %v311_v59  ;;  %vm388_vm1 = vcmp.lt.s32.totalorder %v380_v35, 128 }
  0x3d   : > { %v573_v48 = vsel %vm388_vm1, 1.0, %v692_v10  ;;  %vm389_vm2 = vcmp.lt.s32.totalorder %v381_v46, 128 }
  0x3e   : > { %565 = vmatmul.msk.bf16.vlgmr.msra.gmra.mxu3 %vm317_vm7, %v316_v61  ;;  %v574_v54 = vsel %vm389_vm2, 1.0, %v692_v10 }
  0xaa   : > { %v343_v6 = vpop.f32.mrf.mxu0 }
  0xab   : > { %v406_v15 = vmul.f32 %v567_v11, %v343_v6 }
  0xad   : > { %v348_v9 = vpop.f32.mrf.mxu1  ;;  %v428_v24 = vmul.f32 %v406_v15, %v343_v6 }
  0xae   : > { %v408_v21 = vmul.f32 %v569_v16, %v348_v9 }
  0xb0   : > { %v430_v5 = vmul.f32 %v408_v21, %v348_v9 }
  0xb2   : > { %v345_v17 = vpop.f32.mrf.mxu0 }
  0xb3   : > { %v407_v19 = vmul.f32 %v568_v14, %v345_v17 }
  0xb5   : > { %v414_v25 = vadd.f32 %v407_v19, %v406_v15  ;;  %v429_v26 = vmul.f32 %v407_v19, %v345_v17  ;;  %v350_v27 = vpop.f32.mrf.mxu1 }
  0xb6   : > { %v409_v28 = vmul.f32 %v570_v29, %v350_v27 }
  0xb7   : > { %v436_v31 = vadd.f32 %v429_v26, %v428_v24  ;;  %v353_v32 = vpop.f32.mrf.mxu2  ;;  %v415_v33 = vadd.f32 %v414_v25, %v408_v21 }
  0xb8   : > { %v410_v37 = vmul.f32 %v571_v34, %v353_v32  ;;  %v431_v39 = vmul.f32 %v409_v28, %v350_v27 }
  0xb9   : > { %v437_v36 = vadd.f32 %v436_v31, %v430_v5  ;;  %v416_v38 = vadd.f32 %v415_v33, %v409_v28 }
  0xba   : > { %v432_v43 = vmul.f32 %v410_v37, %v353_v32 }
  0xbb   : > { %v438_v42 = vadd.f32 %v437_v36, %v431_v39  ;;  %v417_v45 = vadd.f32 %v416_v38, %v410_v37 }
  0xbd   : > { %v439_v49 = vadd.f32 %v438_v42, %v432_v43 }
  0xbf   : > { %v355_v23 = vpop.f32.mrf.mxu2 }
  0xc0   : > { %v411_v44 = vmul.f32 %v572_v41, %v355_v23 }
  0xc1   : > { %v358_v47 = vpop.f32.mrf.mxu3 }
  0xc2   : > { %v412_v50 = vmul.f32 %v573_v48, %v358_v47  ;;  %v418_v51 = vadd.f32 %v417_v45, %v411_v44  ;;  %v433_v52 = vmul.f32 %v411_v44, %v355_v23 }
  0xc4   : > { %v440_v53 = vadd.f32 %v439_v49, %v433_v52  ;;  %v434_v55 = vmul.f32 %v412_v50, %v358_v47  ;;  %v419_v56 = vadd.f32 %v418_v51, %v412_v50 }
  0xc6   : > { %v441_v59 = vadd.f32 %v440_v53, %v434_v55 }
  0xc9   : > { %v360_v57 = vpop.f32.mrf.mxu3 }
  0xca   : > { %v413_v58 = vmul.f32 %v574_v54, %v360_v57 }
  0xcc   : > { %v420_v60 = vadd.f32 %v419_v56, %v413_v58  ;;  %v435_v61 = vmul.f32 %v413_v58, %v360_v57 }
  0xce   : > { %v421_v62 = vrot.slane %v420_v60, 4  ;;  %v442_v63 = vadd.f32 %v441_v59, %v435_v61 }
  0xd0   : > { %v422_v0 = vadd.f32 %v421_v62, %v420_v60  ;;  %v443_v1 = vrot.slane %v442_v63, 4 }
  0xd2   : > { %v423_v2 = vrot.slane %v422_v0, 2  ;;  %v444_v3 = vadd.f32 %v443_v1, %v442_v63 }
  0xd4   : > { %v424_v4 = vadd.f32 %v423_v2, %v422_v0  ;;  %v445_v6 = vrot.slane %v444_v3, 2 }
  0xd6   : > { %v425_v7 = vrot.slane %v424_v4, 1  ;;  %v446_v8 = vadd.f32 %v445_v6, %v444_v3 }
  0xd8   : > { %v426_v9 = vadd.f32 %v425_v7, %v424_v4  ;;  %v447_v10 = vrot.slane %v446_v8, 1 }
  0xda   : > { %427 = vst [vmem:[%s225_s12] sm:$0x1] %v426_v9  ;;  %v448_v11 = vadd.f32 %v447_v10, %v446_v8 }
  0xdc   : > { %449 = vst [vmem:[%s225_s12 + $0x1] sm:$0x1] %v448_v11 }
  0xdd PF: > { %s16_s15 = sadd.s32 1, %s689_s15  }
  0xde   : > { %p13_p8 = scmp.ge.s32.totalorder %s16_s15, 4  }
  0xe0   :  { %15 = sbr.rel (!%p13_p8) target bundleno = 1 (0x1), region = 79 }
  0xe5   :  { %486 = vsyncpa [#allocation3], 1 }
  0xe6   :  { %488 = vsyncpa [#allocation3 + $0x1], 1 }

// kernel: _lambda_.9
= control target key start
LH: loop header
LB: loop body
LE: loop exit
PB: predicated region body
PF: predicated region fallthrough
CT: control target
= control target key end

     0   :  { %s732_s18 = smov 0   ;;  %s831_s0 = inlined_call_operand.vmem [shape: s8[128,128], index: 0, kind: input, shape index: {}]   ;;  %s832_s1 = inlined_call_operand.vmem [shape: bf16[128,128], index: 1, kind: input, shape index: {}]   ;;  %s833_s2 = inlined_call_operand.vmem [shape: f32[1,128], index: 2, kind: input, shape index: {}]   ;;  %s834_s3 = inlined_call_operand.vmem [shape: f32[1,128], index: 3, kind: input, shape index: {}]   ;;  %s835_s4 = inlined_call_operand.vmem [shape: bf16[128,128], index: 4, kind: output, shape index: {0}]   ;;  %s836_s5 = inlined_call_operand.vmem [shape: f32[2,2,128], index: 5, kind: output, shape index: {1}]  }
   0x1 LB: > { %s738_s19 = sadd.s32 4294967295, %s700_s18   ;;  %p588_p0 = scmp.ge.s32.totalorder %s700_s18, 1  ;;  %s700_s18 = sphi %s732_s18, %s16_s18  }
   0x2   : > { %p191_p1 = scmp.lt.s32.totalorder %s700_s18, 3 }
   0x4   : > { %p192_p2 = pnand %p588_p0, %p191_p1 }
   0x5   : > { %s589_s22 = sshll.u32 (!%p192_p2), %s738_s19, 1  ;;  %s591_s20 = sshll.u32 (!%p192_p2), %s738_s19, 3 }
   0x6   : > { %195 = sbr.rel (%p192_p2) target bundleno = 215 (0xd7), region = 36  ;;  %p224_p3 = scmp.lt.s32.totalorder (!%p192_p2), %s589_s22, 3 }
   0x7   : > { %p230_p4 = scmp.lt.s32.totalorder (!%p192_p2), %s591_s20, 15  ;;  %s626_s23 = sshll.u32 (!%p192_p2), %s738_s19, 6 }
   0x8   : > { %p235_p5 = scmp.lt.s32.totalorder (!%p192_p2), %s738_s19, 1 }
   0xb   : > { %v636_v0 = vld [vmem:[%s832_s1 + $0x38] sm:$0xff]  ;;  %v635_v1 = vld [vmem:[%s832_s1 + $0x30] sm:$0xff]  ;;  %v634_v2 = vld [vmem:[%s832_s1 + $0x28] sm:$0xff]  ;;  %s838_s22 = smov (!%p224_p3, %s589_s22), 3  ;;  %v410_v35 = vlaneseq  ;;  %s840_s20 = smov (!%p230_p4, %s591_s20), 15  ;;  %v420_v51 = vstv %s626_s23 }
   0xc   : > { %325 = vmatpush.bf16.msra.mxu0 %v636_v0  ;;  %660 = vmatpush.bf16.msra.mxu1 %v636_v0  ;;  %v633_v3 = vld [vmem:[%s832_s1 + $0x20] sm:$0xff]  ;;  %s590_s29 = sshll.u32 %s838_s22, 3  ;;  %v632_v4 = vld [vmem:[%s832_s1 + $0x18] sm:$0xff]  ;;  %v631_v5 = vld [vmem:[%s832_s1 + $0x10] sm:$0xff]  ;;  %s592_s24 = sshll.u32 %s840_s20, 2 }
   0xd   : > { %661 = vmatpush.bf16.msra.mxu2 %v636_v0  ;;  %662 = vmatpush.bf16.msra.mxu3 %v636_v0  ;;  %s227_s9 = scalar_lea.vmem %s831_s0, %s590_s29  ;;  %v630_v12 = vld [vmem:[%s832_s1 + $0x8] sm:$0xff]  ;;  %v629_v21 = vld [vmem:[%s832_s1] sm:$0xff]  ;;  %v411_v38 = vshrl.u32 %v410_v35, 7  ;;  %s793_s27 = scalar_lea.vmem %s835_s4, %s592_s24 }
   0xe   : > { %v239_v6 = vld [vmem:[%s227_s9] sm:$0xff]  ;;  %v240_v7 = vld [vmem:[%s227_s9 + $0x8] sm:$0xff]  ;;  %s842_s19 = smov (!%p235_p5, %s738_s19), 1 }
   0xf   : > { %v241_v8 = vunpack.c.0.s8 %v239_v6  ;;  %v242_v9 = vunpack.c.1.s8 %v239_v6  ;;  %v243_v10 = vunpack.c.2.s8 %v239_v6  ;;  %v244_v11 = vunpack.c.3.s8 %v239_v6  ;;  %v692_v30 = vld [vmem:[%s833_s2] ss:$0 sm:$0xff]  ;;  %s593_s28 = sshll.u32 %s842_s19, 1 }
  0x10   : > { %326 = vmatpush.bf16.msra.mxu0 %v635_v1  ;;  %663 = vmatpush.bf16.msra.mxu1 %v635_v1  ;;  %v245_v13 = vunpack.c.0.s8 %v240_v7  ;;  %v246_v14 = vunpack.c.1.s8 %v240_v7  ;;  %v247_v15 = vunpack.c.2.s8 %v240_v7  ;;  %v248_v16 = vunpack.c.3.s8 %v240_v7  ;;  %v777_v34 = vld [vmem:[%s834_s3] ss:$0 sm:$0xff]  ;;  %s238_s6 = scalar_lea.vmem %s836_s5, %s593_s28 }
  0x11   : > { %664 = vmatpush.bf16.msra.mxu2 %v635_v1  ;;  %665 = vmatpush.bf16.msra.mxu3 %v635_v1  ;;  %v249_v17 = vcvt.s32.f32 %v241_v8  ;;  %v250_v18 = vcvt.s32.f32 %v242_v9  ;;  %v251_v19 = vcvt.s32.f32 %v243_v10  ;;  %v252_v20 = vcvt.s32.f32 %v244_v11 }
  0x12   : > { %v253_v22 = vcvt.s32.f32 %v245_v13  ;;  %v254_v23 = vcvt.s32.f32 %v246_v14  ;;  %v255_v24 = vcvt.s32.f32 %v247_v15  ;;  %v256_v25 = vcvt.s32.f32 %v248_v16 }
  0x13   : > { %v257_v26 = vpack.c.bf16 %v250_v18, %v249_v17  ;;  %v258_v27 = vpack.c.bf16 %v252_v20, %v251_v19  ;;  %v413_v52 = vadd.s32 16, %v411_v38  ;;  %v415_v53 = vadd.s32 32, %v411_v38 }
  0x14   : > { %327 = vmatpush.bf16.msra.mxu0 %v634_v2  ;;  %666 = vmatpush.bf16.msra.mxu1 %v634_v2  ;;  %v259_v28 = vpack.c.bf16 %v254_v23, %v253_v22  ;;  %v260_v29 = vpack.c.bf16 %v256_v25, %v255_v24  ;;  %v417_v57 = vadd.s32 48, %v411_v38  ;;  %v412_v60 = vadd.s32 8, %v411_v38 }
  0x15   : > { %667 = vmatpush.bf16.msra.mxu2 %v634_v2  ;;  %668 = vmatpush.bf16.msra.mxu3 %v634_v2  ;;  %v414_v61 = vadd.s32 24, %v411_v38  ;;  %v416_v62 = vadd.s32 40, %v411_v38  ;;  %v418_v2 = vadd.s32 56, %v411_v38 }
  0x16   : > { %v427_v11 = vadd.s32 %v420_v51, %v417_v57  ;;  %v422_v13 = vadd.s32 %v420_v51, %v412_v60 }
  0x17   : > { %v424_v14 = vadd.s32 %v420_v51, %v414_v61  ;;  %v426_v19 = vadd.s32 %v420_v51, %v416_v62  ;;  %v428_v20 = vadd.s32 %v420_v51, %v418_v2 }
  0x18   : > { %328 = vmatpush.bf16.msra.mxu0 %v633_v3  ;;  %669 = vmatpush.bf16.msra.mxu1 %v633_v3  ;;  %vm435_vm3 = vcmp.lt.s32.totalorder %v427_v11, 128  ;;  %vm430_vm4 = vcmp.lt.s32.totalorder %v422_v13, 128 }
  0x19   : > { %670 = vmatpush.bf16.msra.mxu2 %v633_v3  ;;  %671 = vmatpush.bf16.msra.mxu3 %v633_v3  ;;  %v421_v3 = vadd.s32 %v420_v51, %v411_v38  ;;  %vm432_vm5 = vcmp.lt.s32.totalorder %v424_v14, 128  ;;  %vm434_vm6 = vcmp.lt.s32.totalorder %v426_v19, 128  ;;  %vm436_vm7 = vcmp.lt.s32.totalorder %v428_v20, 128 }
  0x1b   : > { %vm429_vm0 = vcmp.lt.s32.totalorder %v421_v3, 128 }
  0x1c   : > { %329 = vmatpush.bf16.msra.mxu0 %v632_v4  ;;  %672 = vmatpush.bf16.msra.mxu1 %v632_v4 }
  0x1d   : > { %673 = vmatpush.bf16.msra.mxu2 %v632_v4  ;;  %674 = vmatpush.bf16.msra.mxu3 %v632_v4  ;;  %v423_v4 = vadd.s32 %v420_v51, %v413_v52 }
  0x1f   : > { %vm431_vm1 = vcmp.lt.s32.totalorder %v423_v4, 128 }
  0x20   : > { %330 = vmatpush.bf16.msra.mxu0 %v631_v5  ;;  %675 = vmatpush.bf16.msra.mxu1 %v631_v5 }
  0x21   : > { %676 = vmatpush.bf16.msra.mxu2 %v631_v5  ;;  %677 = vmatpush.bf16.msra.mxu3 %v631_v5  ;;  %v425_v5 = vadd.s32 %v420_v51, %v415_v53 }
  0x23   : > { %vm433_vm2 = vcmp.lt.s32.totalorder %v425_v5, 128 }
  0x24   : > { %331 = vmatpush.bf16.msra.mxu0 %v630_v12  ;;  %678 = vmatpush.bf16.msra.mxu1 %v630_v12 }
  0x25   : > { %679 = vmatpush.bf16.msra.mxu2 %v630_v12  ;;  %680 = vmatpush.bf16.msra.mxu3 %v630_v12 }
  0x28   : > { %332 = vmatpush.bf16.msra.mxu0 %v629_v21  ;;  %681 = vmatpush.bf16.msra.mxu1 %v629_v21 }
  0x29   : > { %682 = vmatpush.bf16.msra.mxu2 %v629_v21  ;;  %683 = vmatpush.bf16.msra.mxu3 %v629_v21 }
  0x2b   : > { %333 = vmatmul.bf16.vlgmr.msra.gmra.mxu0 %v257_v26  ;;  %338 = vmatmul.bf16.vlgmr.msra.gmra.mxu1 %v258_v27 }
  0x2c   : > { %343 = vmatmul.bf16.vlgmr.msra.gmra.mxu2 %v259_v28  ;;  %348 = vmatmul.bf16.vlgmr.msra.gmra.mxu3 %v260_v29 }
  0xa8   : > { %v334_v31 = vpop.f32.mrf.mxu0  ;;  %v339_v32 = vpop.f32.mrf.mxu1 }
  0xa9   : > { %v358_v33 = vmul.f32 %v692_v30, %v334_v31  ;;  %v360_v36 = vmul.f32 %v692_v30, %v339_v32 }
  0xab   : > { %v370_v37 = vadd.f32 %v777_v34, %v358_v33  ;;  %v372_v41 = vadd.f32 %v777_v34, %v360_v36 }
  0xad   : > { %v378_v48 = vmax.f32 %v370_v37, 0.0  ;;  %v380_v55 = vmax.f32 %v372_v41, 0.0 }
  0xaf   : > { %v344_v39 = vpop.f32.mrf.mxu2  ;;  %v349_v40 = vpop.f32.mrf.mxu3  ;;  %v386_v63 = vpack.c.bf16 %v378_v48, %v378_v48  ;;  %v388_v9 = vpack.c.bf16 %v380_v55, %v380_v55 }
  0xb0   : > { %v362_v42 = vmul.f32 %v692_v30, %v344_v39  ;;  %v364_v43 = vmul.f32 %v692_v30, %v349_v40  ;;  %v336_v44 = vpop.f32.mrf.mxu0  ;;  %v341_v45 = vpop.f32.mrf.mxu1 }
  0xb1   : > { %v359_v46 = vmul.f32 %v692_v30, %v336_v44  ;;  %v361_v47 = vmul.f32 %v692_v30, %v341_v45  ;;  %v402_v17 = vunpack.c.l.bf16 %v386_v63  ;;  %v404_v22 = vunpack.c.l.bf16 %v388_v9 }
  0xb2   : > { %v374_v49 = vadd.f32 %v777_v34, %v362_v42  ;;  %v376_v50 = vadd.f32 %v777_v34, %v364_v43 }
  0xb3   : > { %v371_v54 = vadd.f32 %v777_v34, %v359_v46  ;;  %v373_v58 = vadd.f32 %v777_v34, %v361_v47  ;;  %v453_v27 = vsel %vm429_vm0, %v402_v17, 3e+38  ;;  %v475_v29 = vsel %vm429_vm0, %v402_v17, -3e+38 }
  0xb4   : > { %v785_v56 = vmax.f32 %v374_v49, 0.0  ;;  %v788_v0 = vmax.f32 %v376_v50, 0.0  ;;  %v455_v33 = vsel %vm431_vm1, %v404_v22, 3e+38  ;;  %v477_v41 = vsel %vm431_vm1, %v404_v22, -3e+38 }
  0xb5   : > { %v379_v59 = vmax.f32 %v371_v54, 0.0  ;;  %v381_v1 = vmax.f32 %v373_v58, 0.0 }
  0xb6   : > { %v390_v10 = vpack.c.bf16 %v785_v56, %v785_v56  ;;  %v392_v18 = vpack.c.bf16 %v788_v0, %v788_v0 }
  0xb7   : > { %v640_v6 = vpack.c.bf16 %v379_v59, %v378_v48  ;;  %v346_v7 = vpop.f32.mrf.mxu2  ;;  %v351_v8 = vpop.f32.mrf.mxu3  ;;  %v645_v12 = vpack.c.bf16 %v381_v1, %v380_v55  ;;  %v387_v21 = vpack.c.bf16 %v379_v59, %v379_v59  ;;  %v389_v24 = vpack.c.bf16 %v381_v1, %v381_v1 }
  0xb8   : > { %v363_v15 = vmul.f32 %v692_v30, %v346_v7  ;;  %v365_v16 = vmul.f32 %v692_v30, %v351_v8  ;;  %v406_v23 = vunpack.c.l.bf16 %v390_v10  ;;  %v408_v28 = vunpack.c.l.bf16 %v392_v18 }
  0xb9   : > { %641 = vst [vmem:[%s793_s27] sm:$0xff] %v640_v6   ;;  %v403_v30 = vunpack.c.l.bf16 %v387_v21  ;;  %v405_v37 = vunpack.c.l.bf16 %v389_v24 }
  0xba   : > { %657 = vst [vmem:[%s793_s27 + $0x8] sm:$0xff] %v645_v12   ;;  %v375_v25 = vadd.f32 %v777_v34, %v363_v15  ;;  %v377_v26 = vadd.f32 %v777_v34, %v365_v16  ;;  %v457_v35 = vsel %vm433_vm2, %v406_v23, 3e+38  ;;  %v479_v36 = vsel %vm433_vm2, %v406_v23, -3e+38 }
  0xbb   : > { %v459_v42 = vsel %vm435_vm3, %v408_v28, 3e+38  ;;  %v481_v43 = vsel %vm435_vm3, %v408_v28, -3e+38  ;;  %v454_v44 = vsel %vm430_vm4, %v403_v30, 3e+38  ;;  %v461_v48 = vmin.f32 %v453_v27, %v457_v35 }
  0xbc   : > { %v383_v31 = vmax.f32 %v375_v25, 0.0  ;;  %v385_v32 = vmax.f32 %v377_v26, 0.0  ;;  %v476_v45 = vsel %vm430_vm4, %v403_v30, -3e+38  ;;  %v483_v49 = vmax.f32 %v475_v29, %v479_v36 }
  0xbd   : > { %v456_v50 = vsel %vm432_vm5, %v405_v37, 3e+38  ;;  %v478_v51 = vsel %vm432_vm5, %v405_v37, -3e+38  ;;  %v463_v52 = vmin.f32 %v455_v33, %v459_v42  ;;  %v485_v60 = vmax.f32 %v477_v41, %v481_v43 }
  0xbe   : > { %v391_v38 = vpack.c.bf16 %v383_v31, %v383_v31  ;;  %v650_v34 = vpack.c.bf16 %v383_v31, %v785_v56  ;;  %v393_v39 = vpack.c.bf16 %v385_v32, %v385_v32  ;;  %v655_v40 = vpack.c.bf16 %v385_v32, %v788_v0 }
  0xc0   : > { %658 = vst [vmem:[%s793_s27 + $0x10] sm:$0xff] %v650_v34   ;;  %v407_v46 = vunpack.c.l.bf16 %v391_v38  ;;  %v409_v47 = vunpack.c.l.bf16 %v393_v39 }
  0xc1   : > { %659 = vst [vmem:[%s793_s27 + $0x18] sm:$0xff] %v655_v40  }
  0xc2   : > { %v458_v53 = vsel %vm434_vm6, %v407_v46, 3e+38  ;;  %v480_v54 = vsel %vm434_vm6, %v407_v46, -3e+38  ;;  %v460_v55 = vsel %vm436_vm7, %v409_v47, 3e+38 }
  0xc3   : > { %v462_v56 = vmin.f32 %v454_v44, %v458_v53  ;;  %v484_v57 = vmax.f32 %v476_v45, %v480_v54  ;;  %v464_v58 = vmin.f32 %v456_v50, %v460_v55  ;;  %v482_v59 = vsel %vm436_vm7, %v409_v47, -3e+38 }
  0xc4   : > { %v486_v61 = vmax.f32 %v478_v51, %v482_v59 }
  0xc5   : > { %v465_v62 = vmin.f32 %v461_v48, %v462_v56  ;;  %v487_v63 = vmax.f32 %v483_v49, %v484_v57  ;;  %v466_v0 = vmin.f32 %v463_v52, %v464_v58 }
  0xc6   : > { %v488_v1 = vmax.f32 %v485_v60, %v486_v61 }
  0xc7   : > { %v467_v2 = vmin.f32 %v465_v62, %v466_v0 }
  0xc8   : > { %v489_v3 = vmax.f32 %v487_v63, %v488_v1 }
  0xc9   : > { %v468_v4 = vrot.slane %v467_v2, 4 }
  0xca   : > { %v490_v5 = vrot.slane %v489_v3, 4 }
  0xcb   : > { %v469_v6 = vmin.f32 %v467_v2, %v468_v4 }
  0xcc   : > { %v491_v7 = vmax.f32 %v489_v3, %v490_v5 }
  0xcd   : > { %v470_v8 = vrot.slane %v469_v6, 2 }
  0xce   : > { %v492_v9 = vrot.slane %v491_v7, 2 }
  0xcf   : > { %v471_v10 = vmin.f32 %v469_v6, %v470_v8 }
  0xd0   : > { %v493_v11 = vmax.f32 %v491_v7, %v492_v9 }
  0xd1   : > { %v472_v12 = vrot.slane %v471_v10, 1 }
  0xd2   : > { %v494_v13 = vrot.slane %v493_v11, 1 }
  0xd3   : > { %v473_v14 = vmin.f32 %v471_v10, %v472_v12 }
  0xd4   : > { %v495_v15 = vmax.f32 %v493_v11, %v494_v13 }
  0xd5   : > { %474 = vst [vmem:[%s238_s6] sm:$0x1] %v473_v14 }
  0xd6   : > { %496 = vst [vmem:[%s238_s6 + $0x1] sm:$0x1] %v495_v15 }
  0xd7 PF: > { %s16_s18 = sadd.s32 1, %s700_s18  }
  0xd8   : > { %p13_p6 = scmp.ge.s32.totalorder %s16_s18, 4  }
  0xda   :  { %15 = sbr.rel (!%p13_p6) target bundleno = 1 (0x1), region = 78 }

// kernel: _lambda_.11
= control target key start
LH: loop header
LB: loop body
LE: loop exit
PB: predicated region body
PF: predicated region fallthrough
CT: control target
= control target key end

     0   :  { %s587_s15 = smov 0   ;;  %s641_s0 = inlined_call_operand.vmem [shape: s8[128,128], index: 0, kind: input, shape index: {}]   ;;  %s642_s1 = inlined_call_operand.vmem [shape: bf16[128,128], index: 1, kind: input, shape index: {}]   ;;  %s643_s2 = inlined_call_operand.vmem [shape: f32[1,128], index: 2, kind: input, shape index: {}]   ;;  %s644_s3 = inlined_call_operand.vmem [shape: f32[1,128], index: 3, kind: input, shape index: {}]   ;;  %s645_s4 = inlined_call_operand.vmem [shape: f32[16,128], index: 4, kind: output, shape index: {}]  }
   0x1 LB: > { %s593_s16 = sadd.s32 4294967295, %s560_s15   ;;  %p474_p0 = scmp.ge.s32.totalorder %s560_s15, 1  ;;  %s560_s15 = sphi %s587_s15, %s14_s15  }
   0x2   : > { %p163_p1 = scmp.lt.s32.totalorder %s560_s15, 3 }
   0x4   : > { %p164_p2 = pnand %p474_p0, %p163_p1 }
   0x5   : > { %s475_s19 = sshll.u32 (!%p164_p2), %s593_s16, 1  ;;  %p194_p4 = scmp.lt.s32.totalorder (!%p164_p2), %s593_s16, 1 }
   0x6   : > { %167 = sbr.rel (%p164_p2) target bundleno = 206 (0xce), region = 36  ;;  %p189_p3 = scmp.lt.s32.totalorder (!%p164_p2), %s475_s19, 3 }
   0xb   : > { %v519_v0 = vld [vmem:[%s642_s1 + $0x38] sm:$0xff]  ;;  %v518_v1 = vld [vmem:[%s642_s1 + $0x30] sm:$0xff]  ;;  %v517_v2 = vld [vmem:[%s642_s1 + $0x28] sm:$0xff]  ;;  %s647_s19 = smov (!%p189_p3, %s475_s19), 3  ;;  %vm401_vm0 = vcmask 1041409   ;;  %vm403_vm1 = vcmask 1042434  }
   0xc   : > { %284 = vmatpush.bf16.msra.mxu0 %v519_v0  ;;  %520 = vmatpush.bf16.msra.mxu1 %v519_v0  ;;  %v516_v3 = vld [vmem:[%s642_s1 + $0x20] sm:$0xff]  ;;  %s476_s26 = sshll.u32 %s647_s19, 3  ;;  %v515_v4 = vld [vmem:[%s642_s1 + $0x18] sm:$0xff]  ;;  %v514_v5 = vld [vmem:[%s642_s1 + $0x10] sm:$0xff]  ;;  %vm405_vm2 = vcmask 1043459   ;;  %s649_s16 = smov (!%p194_p4, %s593_s16), 1 }
   0xd   : > { %521 = vmatpush.bf16.msra.mxu2 %v519_v0  ;;  %522 = vmatpush.bf16.msra.mxu3 %v519_v0  ;;  %s192_s5 = scalar_lea.vmem %s641_s0, %s476_s26  ;;  %v513_v12 = vld [vmem:[%s642_s1 + $0x8] sm:$0xff]  ;;  %v512_v21 = vld [vmem:[%s642_s1] sm:$0xff]  ;;  %vm407_vm3 = vcmask 1044484   ;;  %vm409_vm4 = vcmask 1045509   ;;  %s477_s18 = sshll.u32 %s649_s16, 3  ;;  %vm411_vm5 = vcmask 1046534  }
   0xe   : > { %v198_v6 = vld [vmem:[%s192_s5] sm:$0xff]  ;;  %v199_v7 = vld [vmem:[%s192_s5 + $0x8] sm:$0xff]  ;;  %vm413_vm6 = vcmask 1047559   ;;  %s197_s21 = scalar_lea.vmem %s645_s4, %s477_s18 }
   0xf   : > { %v200_v8 = vunpack.c.0.s8 %v198_v6  ;;  %v201_v9 = vunpack.c.1.s8 %v198_v6  ;;  %v202_v10 = vunpack.c.2.s8 %v198_v6  ;;  %v203_v11 = vunpack.c.3.s8 %v198_v6  ;;  %v552_v30 = vld [vmem:[%s643_s2] ss:$0 sm:$0xff] }
  0x10   : > { %285 = vmatpush.bf16.msra.mxu0 %v518_v1  ;;  %523 = vmatpush.bf16.msra.mxu1 %v518_v1  ;;  %v204_v13 = vunpack.c.0.s8 %v199_v7  ;;  %v205_v14 = vunpack.c.1.s8 %v199_v7  ;;  %v206_v15 = vunpack.c.2.s8 %v199_v7  ;;  %v207_v16 = vunpack.c.3.s8 %v199_v7  ;;  %v553_v31 = vld [vmem:[%s644_s3] ss:$0 sm:$0xff] }
  0x11   : > { %524 = vmatpush.bf16.msra.mxu2 %v518_v1  ;;  %525 = vmatpush.bf16.msra.mxu3 %v518_v1  ;;  %v208_v17 = vcvt.s32.f32 %v200_v8  ;;  %v209_v18 = vcvt.s32.f32 %v201_v9  ;;  %v210_v19 = vcvt.s32.f32 %v202_v10  ;;  %v211_v20 = vcvt.s32.f32 %v203_v11 }
  0x12   : > { %v212_v22 = vcvt.s32.f32 %v204_v13  ;;  %v213_v23 = vcvt.s32.f32 %v205_v14  ;;  %v214_v24 = vcvt.s32.f32 %v206_v15  ;;  %v215_v25 = vcvt.s32.f32 %v207_v16 }
  0x13   : > { %v216_v26 = vpack.c.bf16 %v209_v18, %v208_v17  ;;  %v217_v27 = vpack.c.bf16 %v211_v20, %v210_v19 }
  0x14   : > { %286 = vmatpush.bf16.msra.mxu0 %v517_v2  ;;  %526 = vmatpush.bf16.msra.mxu1 %v517_v2  ;;  %v218_v28 = vpack.c.bf16 %v213_v23, %v212_v22  ;;  %v219_v29 = vpack.c.bf16 %v215_v25, %v214_v24 }
  0x15   : > { %527 = vmatpush.bf16.msra.mxu2 %v517_v2  ;;  %528 = vmatpush.bf16.msra.mxu3 %v517_v2 }
  0x18   : > { %287 = vmatpush.bf16.msra.mxu0 %v516_v3  ;;  %529 = vmatpush.bf16.msra.mxu1 %v516_v3 }
  0x19   : > { %530 = vmatpush.bf16.msra.mxu2 %v516_v3  ;;  %531 = vmatpush.bf16.msra.mxu3 %v516_v3 }
  0x1c   : > { %288 = vmatpush.bf16.msra.mxu0 %v515_v4  ;;  %532 = vmatpush.bf16.msra.mxu1 %v515_v4 }
  0x1d   : > { %533 = vmatpush.bf16.msra.mxu2 %v515_v4  ;;  %534 = vmatpush.bf16.msra.mxu3 %v515_v4 }
  0x20   : > { %289 = vmatpush.bf16.msra.mxu0 %v514_v5  ;;  %535 = vmatpush.bf16.msra.mxu1 %v514_v5 }
  0x21   : > { %536 = vmatpush.bf16.msra.mxu2 %v514_v5  ;;  %537 = vmatpush.bf16.msra.mxu3 %v514_v5 }
  0x24   : > { %290 = vmatpush.bf16.msra.mxu0 %v513_v12  ;;  %538 = vmatpush.bf16.msra.mxu1 %v513_v12 }
  0x25   : > { %539 = vmatpush.bf16.msra.mxu2 %v513_v12  ;;  %540 = vmatpush.bf16.msra.mxu3 %v513_v12 }
  0x28   : > { %291 = vmatpush.bf16.msra.mxu0 %v512_v21  ;;  %541 = vmatpush.bf16.msra.mxu1 %v512_v21 }
  0x29   : > { %542 = vmatpush.bf16.msra.mxu2 %v512_v21  ;;  %543 = vmatpush.bf16.msra.mxu3 %v512_v21 }
  0x2b   : > { %292 = vmatmul.bf16.vlgmr.msra.gmra.mxu0 %v216_v26  ;;  %297 = vmatmul.bf16.vlgmr.msra.gmra.mxu1 %v217_v27 }
  0x2c   : > { %302 = vmatmul.bf16.vlgmr.msra.gmra.mxu2 %v218_v28  ;;  %307 = vmatmul.bf16.vlgmr.msra.gmra.mxu3 %v219_v29 }
  0xa8   : > { %v293_v32 = vpop.f32.mrf.mxu0  ;;  %v298_v33 = vpop.f32.mrf.mxu1 }
  0xa9   : > { %v317_v34 = vmul.f32 %v552_v30, %v293_v32  ;;  %v319_v35 = vmul.f32 %v552_v30, %v298_v33 }
  0xab   : > { %v329_v36 = vadd.f32 %v553_v31, %v317_v34  ;;  %v331_v37 = vadd.f32 %v553_v31, %v319_v35 }
  0xad   : > { %v337_v38 = vmax.f32 %v329_v36, 0.0  ;;  %v339_v39 = vmax.f32 %v331_v37, 0.0 }
  0xaf   : > { %v345_v40 = vrot.slane %v337_v38, 4  ;;  %v357_v41 = vrot.slane %v339_v39, 4  ;;  %v303_v42 = vpop.f32.mrf.mxu2  ;;  %v308_v43 = vpop.f32.mrf.mxu3 }
  0xb0   : > { %v321_v44 = vmul.f32 %v552_v30, %v303_v42  ;;  %v323_v45 = vmul.f32 %v552_v30, %v308_v43  ;;  %v295_v46 = vpop.f32.mrf.mxu0  ;;  %v300_v47 = vpop.f32.mrf.mxu1 }
  0xb1   : > { %v346_v48 = vmax.f32 %v337_v38, %v345_v40  ;;  %v318_v49 = vmul.f32 %v552_v30, %v295_v46  ;;  %v320_v50 = vmul.f32 %v552_v30, %v300_v47  ;;  %v358_v51 = vmax.f32 %v339_v39, %v357_v41 }
  0xb2   : > { %v333_v52 = vadd.f32 %v553_v31, %v321_v44  ;;  %v335_v53 = vadd.f32 %v553_v31, %v323_v45 }
  0xb3   : > { %v330_v54 = vadd.f32 %v553_v31, %v318_v49  ;;  %v332_v55 = vadd.f32 %v553_v31, %v320_v50  ;;  %v347_v58 = vrot.slane %v346_v48, 2  ;;  %v359_v61 = vrot.slane %v358_v51, 2 }
  0xb4   : > { %v341_v56 = vmax.f32 %v333_v52, 0.0  ;;  %v343_v57 = vmax.f32 %v335_v53, 0.0 }
  0xb5   : > { %v338_v59 = vmax.f32 %v330_v54, 0.0  ;;  %v340_v60 = vmax.f32 %v332_v55, 0.0  ;;  %v348_v7 = vmax.f32 %v346_v48, %v347_v58  ;;  %v360_v11 = vmax.f32 %v358_v51, %v359_v61 }
  0xb6   : > { %v369_v62 = vrot.slane %v341_v56, 4  ;;  %v381_v63 = vrot.slane %v343_v57, 4 }
  0xb7   : > { %v351_v0 = vrot.slane %v338_v59, 4  ;;  %v363_v1 = vrot.slane %v340_v60, 4  ;;  %v305_v2 = vpop.f32.mrf.mxu2  ;;  %v310_v3 = vpop.f32.mrf.mxu3  ;;  %v349_v19 = vrot.slane %v348_v7, 1  ;;  %v361_v23 = vrot.slane %v360_v11, 1 }
  0xb8   : > { %v370_v4 = vmax.f32 %v341_v56, %v369_v62  ;;  %v322_v5 = vmul.f32 %v552_v30, %v305_v2  ;;  %v324_v6 = vmul.f32 %v552_v30, %v310_v3  ;;  %v382_v8 = vmax.f32 %v343_v57, %v381_v63 }
  0xb9   : > { %v352_v9 = vmax.f32 %v338_v59, %v351_v0  ;;  %v364_v10 = vmax.f32 %v340_v60, %v363_v1  ;;  %v362_v34 = vmax.f32 %v360_v11, %v361_v23 }
  0xba   : > { %v334_v12 = vadd.f32 %v553_v31, %v322_v5  ;;  %v336_v13 = vadd.f32 %v553_v31, %v324_v6  ;;  %v371_v14 = vrot.slane %v370_v4, 2  ;;  %v383_v20 = vrot.slane %v382_v8, 2 }
  0xbb   : > { %v353_v15 = vrot.slane %v352_v9, 2  ;;  %v365_v16 = vrot.slane %v364_v10, 2  ;;  %v350_v31 = vmax.f32 %v348_v7, %v349_v19 }
  0xbc   : > { %v342_v17 = vmax.f32 %v334_v12, 0.0  ;;  %v344_v18 = vmax.f32 %v336_v13, 0.0  ;;  %v372_v26 = vmax.f32 %v370_v4, %v371_v14  ;;  %v384_v32 = vmax.f32 %v382_v8, %v383_v20 }
  0xbd   : > { %v354_v21 = vmax.f32 %v352_v9, %v353_v15  ;;  %v366_v22 = vmax.f32 %v364_v10, %v365_v16 }
  0xbe   : > { %v375_v24 = vrot.slane %v342_v17, 4  ;;  %v387_v25 = vrot.slane %v344_v18, 4  ;;  %v373_v37 = vrot.slane %v372_v26, 1  ;;  %v385_v43 = vrot.slane %v384_v32, 1 }
  0xbf   : > { %v355_v27 = vrot.slane %v354_v21, 1  ;;  %v367_v28 = vrot.slane %v366_v22, 1 }
  0xc0   : > { %v376_v29 = vmax.f32 %v342_v17, %v375_v24  ;;  %v388_v30 = vmax.f32 %v344_v18, %v387_v25  ;;  %v374_v47 = vmax.f32 %v372_v26, %v373_v37  ;;  %v386_v49 = vmax.f32 %v384_v32, %v385_v43 }
  0xc1   : > { %v356_v33 = vmax.f32 %v354_v21, %v355_v27  ;;  %v368_v39 = vmax.f32 %v366_v22, %v367_v28 }
  0xc2   : > { %v377_v35 = vrot.slane %v376_v29, 2  ;;  %v389_v36 = vrot.slane %v388_v30, 2 }
  0xc3   : > { %v402_v38 = vsel %vm401_vm0, %v356_v33, %v350_v31 }
  0xc4   : > { %v404_v40 = vsel %vm403_vm1, %v362_v34, %v402_v38  ;;  %v378_v41 = vmax.f32 %v376_v29, %v377_v35  ;;  %v390_v42 = vmax.f32 %v388_v30, %v389_v36 }
  0xc5   : > { %v406_v44 = vsel %vm405_vm2, %v368_v39, %v404_v40 }
  0xc6   : > { %v379_v45 = vrot.slane %v378_v41, 1  ;;  %v391_v46 = vrot.slane %v390_v42, 1  ;;  %v408_v50 = vsel %vm407_vm3, %v374_v47, %v406_v44 }
  0xc8   : > { %v380_v48 = vmax.f32 %v378_v41, %v379_v45  ;;  %v392_v52 = vmax.f32 %v390_v42, %v391_v46 }
  0xca   : > { %v410_v51 = vsel %vm409_vm4, %v380_v48, %v408_v50 }
  0xcb   : > { %v412_v53 = vsel %vm411_vm5, %v386_v49, %v410_v51 }
  0xcc   : > { %v414_v54 = vsel %vm413_vm6, %v392_v52, %v412_v53 }
  0xcd   : > { %416 = vst [vmem:[%s197_s21] sm:$0xff] %v414_v54 }
  0xce PF: > { %s14_s15 = sadd.s32 1, %s560_s15  }
  0xcf   : > { %p11_p5 = scmp.ge.s32.totalorder %s14_s15, 4  }
  0xd1   :  { %13 = sbr.rel (!%p11_p5) target bundleno = 1 (0x1), region = 66 }

</bundles_post_ra>
